<compile_context>
chip_gen: v7x
topology: tpu7x:2x2x1
jax: 0.10.0
libtpu: 0.0.40
codegen_flags: <defaults>
</compile_context>

<pallas_src>
import functools

import jax
import jax.numpy as jnp
from jax.experimental import pallas as pl
from jax.experimental.pallas import tpu as pltpu

_EPS = 1e-5   # nn.GroupNorm default
_PAD = 128    # lane-aligned halo on each side of the flattened H*W axis


def _gelu(x):
    # tanh-approx GELU (tanh runs in the EUP slot); |err| vs exact erf-GELU
    # is ~1e-3, inside the validation tolerance below.
    c = 0.7978845608028654  # sqrt(2/pi)
    return 0.5 * x * (1.0 + jnp.tanh(c * (x + 0.044715 * x * x * x)))


def _groupnorm1(x, gamma, beta):
    # GroupNorm(num_groups=1): normalize over all (C, H*W) elements of a sample.
    # Single traversal: sum(x) and sum(x*x) computed together, f32 stats.
    n = float(x.shape[0] * x.shape[1])
    s = jnp.sum(x)
    ss = jnp.sum(x * x)
    mean = s / n
    var = jnp.maximum(ss / n - mean * mean, 0.0)
    return (x - mean) * jax.lax.rsqrt(var + _EPS) * gamma + beta


def _conv3x3(pad_ref, w_ref, mask_l, mask_r, H, W):
    """3x3 / pad=1 conv as 9 tap matmuls against a flat zero-haloed source.

    pad_ref : (C, 2*_PAD + H*W) bf16, zero halo of _PAD lanes on each side
    w_ref   : (3, 3, Co, C)     bf16 per-tap weights (output channels first)
    mask_*  : (1, H*W)          bf16 column masks for the +-1 horizontal taps
    returns : (Co, H*W)         f32 (accumulated across taps)
    """
    HW = H * W
    acc = None
    for di in (-1, 0, 1):
        for dj in (-1, 0, 1):
            # Flat-index trick: tap (di, dj) is the contiguous slice starting
            # at _PAD + di*W + dj. Vertical out-of-range reads land in the zero
            # halo; the horizontal wrap (w == 0 / W-1) is killed by the masks.
            s = _PAD + di * W + dj
            patch = pad_ref[:, s:s + HW]                       # bf16 (C, HW)
            if dj == -1:
                patch = patch * mask_l
            elif dj == 1:
                patch = patch * mask_r
            contrib = jnp.dot(w_ref[di + 1, dj + 1], patch,
                              preferred_element_type=jnp.float32)
            acc = contrib if acc is None else acc + contrib
    return acc


def _double_conv_kernel(x_ref, w1t_ref, g1_ref, b1_ref, w2t_ref, g2_ref,
                        b2_ref, o_ref, xpad_ref, hpad_ref, *, H, W, residual):
    """One batch sample per grid step (transposed, lane-dense layout).

    x_ref    : (1, Cin, H*W)          bf16 raw input sample
    w1t_ref  : (3, 3, Cmid, Cin)      bf16 conv1 per-tap weights
    w2t_ref  : (3, 3, Cout, Cmid)     bf16 conv2 per-tap weights
    g*/b*    : (C, 1)                 f32 GroupNorm affine params
    o_ref    : (1, Cout, H*W)         f32 lane-dense output
    xpad_ref : (Cin,  2*_PAD + H*W)   bf16 zero-haloed staged input
    hpad_ref : (Cmid, 2*_PAD + H*W)   bf16 zero-haloed staged intermediate
    """
    HW = H * W
    Cin = x_ref.shape[1]
    Cmid = hpad_ref.shape[0]

    # Column masks for the +-1 horizontal taps, generated in-kernel (computed
    # once here and reused by both convs — no mask inputs, no re-broadcast).
    col = jax.lax.broadcasted_iota(jnp.int32, (1, HW), 1) % W
    mask_l = jnp.where(col != 0, 1.0, 0.0).astype(jnp.bfloat16)
    mask_r = jnp.where(col != W - 1, 1.0, 0.0).astype(jnp.bfloat16)

    # ---- stage raw input into the zero-haloed flat scratch (lane-aligned) ----
    # Only the halos need zeros; the interior is fully overwritten every step
    # (per-step so it stays correct when the batch axis is sharded across cores).
    xpad_ref[:, 0:_PAD] = jnp.zeros((Cin, _PAD), jnp.bfloat16)
    xpad_ref[:, _PAD + HW:2 * _PAD + HW] = jnp.zeros((Cin, _PAD), jnp.bfloat16)
    xpad_ref[:, _PAD:_PAD + HW] = x_ref[0]

    # ---- conv1: 9 bf16 tap matmuls, f32 accumulation ----
    h = _conv3x3(xpad_ref, w1t_ref, mask_l, mask_r, H, W)       # (Cmid, HW) f32

    # ---- GroupNorm(1, Cmid) + GELU (f32 elementwise, lane-dense) ----
    h = _gelu(_groupnorm1(h, g1_ref[...], b1_ref[...]))

    # ---- stage intermediate into the second zero-haloed bf16 scratch ----
    hpad_ref[:, 0:_PAD] = jnp.zeros((Cmid, _PAD), jnp.bfloat16)
    hpad_ref[:, _PAD + HW:2 * _PAD + HW] = jnp.zeros((Cmid, _PAD), jnp.bfloat16)
    hpad_ref[:, _PAD:_PAD + HW] = h.astype(jnp.bfloat16)

    # ---- conv2: 9 bf16 tap matmuls, f32 accumulation ----
    y = _conv3x3(hpad_ref, w2t_ref, mask_l, mask_r, H, W)       # (Cout, HW) f32

    # ---- GroupNorm(1, Cout) (+ optional residual GELU), lane-dense store ----
    y = _groupnorm1(y, g2_ref[...], b2_ref[...])
    if residual:
        y = _gelu(x_ref[0].astype(jnp.float32) + y)             # Cin == Cout
    o_ref[0] = y


def double_conv(x_nchw, params, *, residual=False):
    """Pallas DoubleConv. x_nchw: (N, Cin, H, W) float -> (N, Cout, H, W) f32."""
    w1, g1, b1, w2, g2, b2 = params
    N, Cin, H, W = x_nchw.shape
    Cmid = w1.shape[-1]
    Cout = w2.shape[-1]
    HW = H * W
    assert W + 1 <= _PAD, "flat-halo conv trick assumes W < 127"
    if residual:
        assert Cin == Cout, "residual path requires in_channels == out_channels"

    # bf16 MXU feeds; f32 accumulation / GroupNorm stats happen in the kernel.
    x = x_nchw.reshape(N, Cin, HW).astype(jnp.bfloat16)
    w1t = jnp.transpose(w1, (0, 1, 3, 2)).astype(jnp.bfloat16)   # (3,3,Cmid,Cin)
    w2t = jnp.transpose(w2, (0, 1, 3, 2)).astype(jnp.bfloat16)   # (3,3,Cout,Cmid)
    g1c = g1.reshape(Cmid, 1).astype(jnp.float32)
    b1c = b1.reshape(Cmid, 1).astype(jnp.float32)
    g2c = g2.reshape(Cout, 1).astype(jnp.float32)
    b2c = b2.reshape(Cout, 1).astype(jnp.float32)

    kernel = functools.partial(_double_conv_kernel, H=H, W=W, residual=residual)
    # NOTE: at production sizes (large H*W*C) this whole-image-per-sample block
    # should become a row-block grid over H*W with a two-pass GroupNorm (stats
    # pass + normalize pass) so tiles fit v7x's 64 MiB VMEM; the demo shapes are
    # per-step-overhead-bound instead, which is accepted here.
    out = pl.pallas_call(
        kernel,
        out_shape=jax.ShapeDtypeStruct((N, Cout, HW), jnp.float32),
        grid=(N,),
        in_specs=[
            pl.BlockSpec((1, Cin, HW), lambda n: (n, 0, 0)),
            pl.BlockSpec((3, 3, Cmid, Cin), lambda n: (0, 0, 0, 0)),
            pl.BlockSpec((Cmid, 1), lambda n: (0, 0)),
            pl.BlockSpec((Cmid, 1), lambda n: (0, 0)),
            pl.BlockSpec((3, 3, Cout, Cmid), lambda n: (0, 0, 0, 0)),
            pl.BlockSpec((Cout, 1), lambda n: (0, 0)),
            pl.BlockSpec((Cout, 1), lambda n: (0, 0)),
        ],
        out_specs=pl.BlockSpec((1, Cout, HW), lambda n: (n, 0, 0)),
        scratch_shapes=[
            pltpu.VMEM((Cin, 2 * _PAD + HW), jnp.bfloat16),
            pltpu.VMEM((Cmid, 2 * _PAD + HW), jnp.bfloat16),
        ],
        compiler_params=pltpu.CompilerParams(
            dimension_semantics=("parallel",),
            vmem_limit_bytes=32 * 1024 * 1024),
    )(x, w1t, g1c, b1c, w2t, g2c, b2c)
    return out.reshape(N, Cout, H, W)                            # already NCHW


# ------------------------- pure-JAX reference (for validation) -------------------------
def ref_double_conv(x_nchw, params, *, residual=False):
    w1, g1, b1, w2, g2, b2 = params
    x = jnp.transpose(x_nchw, (0, 2, 3, 1)).astype(jnp.float32)   # NHWC

    def conv(h, w):
        # default (MXU) precision, same class as the kernel's bf16 dots
        return jax.lax.conv_general_dilated(
            h, w, (1, 1), ((1, 1), (1, 1)),
            dimension_numbers=("NHWC", "HWIO", "NHWC"))

    def gn(h, g, b):
        mean = jnp.mean(h, axis=(1, 2, 3), keepdims=True)
        var = jnp.mean((h - mean) ** 2, axis=(1, 2, 3), keepdims=True)
        return ((h - mean) * jax.lax.rsqrt(var + _EPS)
                * g.reshape(1, 1, 1, -1) + b.reshape(1, 1, 1, -1))

    h = jax.nn.gelu(gn(conv(x, w1), g1, b1), approximate=False)
    y = gn(conv(h, w2), g2, b2)
    if residual:
        y = jax.nn.gelu(x + y, approximate=False)
    return jnp.transpose(y, (0, 3, 1, 2))


def init_params(key, in_channels, out_channels, mid_channels=None):
    if mid_channels is None:
        mid_channels = out_channels
    k1, k2, k3, k4, k5, k6 = jax.random.split(key, 6)
    w1 = jax.random.normal(k1, (3, 3, in_channels, mid_channels),
                           jnp.float32) / (3.0 * in_channels ** 0.5)
    w2 = jax.random.normal(k2, (3, 3, mid_channels, out_channels),
                           jnp.float32) / (3.0 * mid_channels ** 0.5)
    g1 = 1.0 + 0.1 * jax.random.normal(k3, (mid_channels,), jnp.float32)
    b1 = 0.1 * jax.random.normal(k4, (mid_channels,), jnp.float32)
    g2 = 1.0 + 0.1 * jax.random.normal(k5, (out_channels,), jnp.float32)
    b2 = 0.1 * jax.random.normal(k6, (out_channels,), jnp.float32)
    return (w1, g1, b1, w2, g2, b2)


if __name__ == "__main__":
    key = jax.random.PRNGKey(0)
    kx, kp1, kp2 = jax.random.split(key, 3)
    x = jax.random.normal(kx, (2, 4, 16, 16), jnp.float32)   # NCHW, like PyTorch

    # tolerance covers bf16 operand rounding (already implied by default MXU
    # precision) plus the tanh-GELU approximation (~1e-3).
    TOL = 3e-2

    # non-residual: in=4 -> mid=out=8
    params = init_params(kp1, 4, 8)
    out = jax.block_until_ready(double_conv(x, params, residual=False))
    assert out.shape == (2, 8, 16, 16)
    err = float(jnp.max(jnp.abs(out - ref_double_conv(x, params, residual=False))))
    assert err < TOL, f"mismatch (non-residual): {err}"

    # residual variant: in=out=4, out = gelu(x + double_conv(x))
    params_r = init_params(kp2, 4, 4)
    out_r = jax.block_until_ready(double_conv(x, params_r, residual=True))
    assert out_r.shape == (2, 4, 16, 16)
    err_r = float(jnp.max(jnp.abs(out_r - ref_double_conv(x, params_r, residual=True))))
    assert err_r < TOL, f"mismatch (residual): {err_r}"

    print("KERNEL_OK")
</pallas_src>

<mosaic_0001>
module attributes {stable_mosaic.version = 11 : i64} {
  func.func @_double_conv_kernel(%arg0: i32, %arg1: memref<1x4x256xbf16, #tpu.memory_space<vmem>>, %arg2: memref<3x3x8x4xbf16, #tpu.memory_space<vmem>>, %arg3: memref<8x1xf32, #tpu.memory_space<vmem>>, %arg4: memref<8x1xf32, #tpu.memory_space<vmem>>, %arg5: memref<3x3x8x8xbf16, #tpu.memory_space<vmem>>, %arg6: memref<8x1xf32, #tpu.memory_space<vmem>>, %arg7: memref<8x1xf32, #tpu.memory_space<vmem>>, %arg8: memref<1x8x256xf32, #tpu.memory_space<vmem>>, %arg9: memref<4x512xbf16, #tpu.memory_space<vmem>>, %arg10: memref<8x512xbf16, #tpu.memory_space<vmem>>) attributes {dimension_semantics = [#tpu.dimension_semantics<parallel>], iteration_bounds = array<i64: 2>, scalar_prefetch = 0 : i64, scratch_operands = 2 : i64, tpu.core_type = #tpu.core_type<tc>, window_params = [{transform_indices = @transform_0, window_bounds = array<i64: 1, 4, 256>}, {pipeline_mode = #tpu.pipeline_mode<synchronous>, transform_indices = @transform_1, window_bounds = array<i64: 3, 3, 8, 4>}, {pipeline_mode = #tpu.pipeline_mode<synchronous>, transform_indices = @transform_2, window_bounds = array<i64: 8, 1>}, {pipeline_mode = #tpu.pipeline_mode<synchronous>, transform_indices = @transform_3, window_bounds = array<i64: 8, 1>}, {pipeline_mode = #tpu.pipeline_mode<synchronous>, transform_indices = @transform_4, window_bounds = array<i64: 3, 3, 8, 8>}, {pipeline_mode = #tpu.pipeline_mode<synchronous>, transform_indices = @transform_5, window_bounds = array<i64: 8, 1>}, {pipeline_mode = #tpu.pipeline_mode<synchronous>, transform_indices = @transform_6, window_bounds = array<i64: 8, 1>}, {transform_indices = @transform_7, window_bounds = array<i64: 1, 8, 256>}]} {
    %0 = tpu.iota {dimensions = array<i32: 1>} : vector<1x256xi32>
    %c16_i32 = arith.constant 16 : i32
    %c0_i32 = arith.constant 0 : i32
    %1 = arith.cmpi eq, %c16_i32, %c0_i32 : i32
    %c1_i32 = arith.constant 1 : i32
    %2 = arith.select %1, %c1_i32, %c16_i32 : i32
    %3 = vector.broadcast %2 : i32 to vector<1x256xi32>
    %4 = arith.remsi %0, %3 : vector<1x256xi32>
    %c0_i32_0 = arith.constant 0 : i32
    %5 = vector.broadcast %c0_i32_0 : i32 to vector<1x256xi32>
    %6 = arith.cmpi ne, %4, %5 : vector<1x256xi32>
    %c0_i32_1 = arith.constant 0 : i32
    %7 = vector.broadcast %c0_i32_1 : i32 to vector<1x256xi32>
    %8 = arith.cmpi slt, %4, %7 : vector<1x256xi32>
    %c0_i32_2 = arith.constant 0 : i32
    %9 = arith.cmpi slt, %2, %c0_i32_2 : i32
    %10 = vector.broadcast %9 : i1 to vector<1x256xi1>
    %11 = vector.broadcast %10 : vector<1x256xi1> to vector<1x256xi1>
    %12 = arith.xori %8, %11 : vector<1x256xi1>
    %13 = arith.andi %12, %6 : vector<1x256xi1>
    %14 = vector.broadcast %2 : i32 to vector<1x256xi32>
    %15 = arith.addi %4, %14 : vector<1x256xi32>
    %16 = arith.select %13, %15, %4 : vector<1x256xi1>, vector<1x256xi32>
    %c0_i32_3 = arith.constant 0 : i32
    %17 = vector.broadcast %c0_i32_3 : i32 to vector<1x256xi32>
    %18 = arith.cmpi ne, %16, %17 : vector<1x256xi32>
    %cst = arith.constant 1.000000e+00 : f32
    %cst_4 = arith.constant 0.000000e+00 : f32
    %19 = vector.broadcast %cst : f32 to vector<1x256xf32>
    %20 = vector.broadcast %cst_4 : f32 to vector<1x256xf32>
    %21 = arith.select %18, %19, %20 : vector<1x256xi1>, vector<1x256xf32>
    %22 = arith.truncf %21 : vector<1x256xf32> to vector<1x256xbf16>
    %c15_i32 = arith.constant 15 : i32
    %23 = vector.broadcast %c15_i32 : i32 to vector<1x256xi32>
    %24 = arith.cmpi ne, %16, %23 : vector<1x256xi32>
    %cst_5 = arith.constant 1.000000e+00 : f32
    %cst_6 = arith.constant 0.000000e+00 : f32
    %25 = vector.broadcast %cst_5 : f32 to vector<1x256xf32>
    %26 = vector.broadcast %cst_6 : f32 to vector<1x256xf32>
    %27 = arith.select %24, %25, %26 : vector<1x256xi1>, vector<1x256xf32>
    %28 = arith.truncf %27 : vector<1x256xf32> to vector<1x256xbf16>
    %cst_7 = arith.constant 0.000000e+00 : bf16
    %29 = vector.broadcast %cst_7 : bf16 to vector<4x128xbf16>
    %c0 = arith.constant 0 : index
    %c0_8 = arith.constant 0 : index
    %30 = vector.load %arg9[%c0, %c0_8] : memref<4x512xbf16, #tpu.memory_space<vmem>>, vector<4x128xbf16>
    tpu.vector_store %arg9[%c0, %c0_8], %29 {strides = array<i32>} : memref<4x512xbf16, #tpu.memory_space<vmem>>, vector<4x128xbf16>,
    %cst_9 = arith.constant 0.000000e+00 : bf16
    %31 = vector.broadcast %cst_9 : bf16 to vector<4x128xbf16>
    %c0_10 = arith.constant 0 : index
    %c384 = arith.constant 384 : index
    %32 = vector.load %arg9[%c0_10, %c384] : memref<4x512xbf16, #tpu.memory_space<vmem>>, vector<4x128xbf16>
    tpu.vector_store %arg9[%c0_10, %c384], %31 {strides = array<i32>} : memref<4x512xbf16, #tpu.memory_space<vmem>>, vector<4x128xbf16>,
    %c0_11 = arith.constant 0 : index
    %c0_12 = arith.constant 0 : index
    %c0_13 = arith.constant 0 : index
    %33 = vector.load %arg1[%c0_11, %c0_12, %c0_13] : memref<1x4x256xbf16, #tpu.memory_space<vmem>>, vector<1x4x256xbf16>
    %34 = vector.shape_cast %33 : vector<1x4x256xbf16> to vector<4x256xbf16>
    %c0_14 = arith.constant 0 : index
    %c128 = arith.constant 128 : index
    %35 = vector.load %arg9[%c0_14, %c128] : memref<4x512xbf16, #tpu.memory_space<vmem>>, vector<4x256xbf16>
    tpu.vector_store %arg9[%c0_14, %c128], %34 {strides = array<i32>} : memref<4x512xbf16, #tpu.memory_space<vmem>>, vector<4x256xbf16>,
    %c0_15 = arith.constant 0 : index
    %c111 = arith.constant 111 : index
    %36 = vector.load %arg9[%c0_15, %c111] : memref<4x512xbf16, #tpu.memory_space<vmem>>, vector<4x256xbf16>
    %37 = vector.broadcast %22 : vector<1x256xbf16> to vector<4x256xbf16>
    %38 = arith.mulf %36, %37 : vector<4x256xbf16>
    %c0_16 = arith.constant 0 : index
    %c0_17 = arith.constant 0 : index
    %c0_18 = arith.constant 0 : index
    %c0_19 = arith.constant 0 : index
    %39 = vector.load %arg2[%c0_16, %c0_17, %c0_18, %c0_19] : memref<3x3x8x4xbf16, #tpu.memory_space<vmem>>, vector<1x1x8x4xbf16>
    %40 = vector.shape_cast %39 : vector<1x1x8x4xbf16> to vector<8x4xbf16>
    %cst_20 = arith.constant dense<0.000000e+00> : vector<8x256xf32>
    %41 = tpu.matmul %40, %38, %cst_20 {dimension_numbers = #tpu.dot_dimension_numbers<[1], [0], [0], [1], [0, 0, 1, 1], [], []>} : vector<8x4xbf16>, vector<4x256xbf16>, vector<8x256xf32> -> vector<8x256xf32>
    %c0_21 = arith.constant 0 : index
    %c112 = arith.constant 112 : index
    %42 = vector.load %arg9[%c0_21, %c112] : memref<4x512xbf16, #tpu.memory_space<vmem>>, vector<4x256xbf16>
    %c0_22 = arith.constant 0 : index
    %c1 = arith.constant 1 : index
    %c0_23 = arith.constant 0 : index
    %c0_24 = arith.constant 0 : index
    %43 = vector.load %arg2[%c0_22, %c1, %c0_23, %c0_24] : memref<3x3x8x4xbf16, #tpu.memory_space<vmem>>, vector<1x1x8x4xbf16>
    %44 = vector.shape_cast %43 : vector<1x1x8x4xbf16> to vector<8x4xbf16>
    %cst_25 = arith.constant dense<0.000000e+00> : vector<8x256xf32>
    %45 = tpu.matmul %44, %42, %cst_25 {dimension_numbers = #tpu.dot_dimension_numbers<[1], [0], [0], [1], [0, 0, 1, 1], [], []>} : vector<8x4xbf16>, vector<4x256xbf16>, vector<8x256xf32> -> vector<8x256xf32>
    %46 = arith.addf %41, %45 : vector<8x256xf32>
    %c0_26 = arith.constant 0 : index
    %c113 = arith.constant 113 : index
    %47 = vector.load %arg9[%c0_26, %c113] : memref<4x512xbf16, #tpu.memory_space<vmem>>, vector<4x256xbf16>
    %48 = vector.broadcast %28 : vector<1x256xbf16> to vector<4x256xbf16>
    %49 = arith.mulf %47, %48 : vector<4x256xbf16>
    %c0_27 = arith.constant 0 : index
    %c2 = arith.constant 2 : index
    %c0_28 = arith.constant 0 : index
    %c0_29 = arith.constant 0 : index
    %50 = vector.load %arg2[%c0_27, %c2, %c0_28, %c0_29] : memref<3x3x8x4xbf16, #tpu.memory_space<vmem>>, vector<1x1x8x4xbf16>
    %51 = vector.shape_cast %50 : vector<1x1x8x4xbf16> to vector<8x4xbf16>
    %cst_30 = arith.constant dense<0.000000e+00> : vector<8x256xf32>
    %52 = tpu.matmul %51, %49, %cst_30 {dimension_numbers = #tpu.dot_dimension_numbers<[1], [0], [0], [1], [0, 0, 1, 1], [], []>} : vector<8x4xbf16>, vector<4x256xbf16>, vector<8x256xf32> -> vector<8x256xf32>
    %53 = arith.addf %46, %52 : vector<8x256xf32>
    %c0_31 = arith.constant 0 : index
    %c127 = arith.constant 127 : index
    %54 = vector.load %arg9[%c0_31, %c127] : memref<4x512xbf16, #tpu.memory_space<vmem>>, vector<4x256xbf16>
    %55 = vector.broadcast %22 : vector<1x256xbf16> to vector<4x256xbf16>
    %56 = arith.mulf %54, %55 : vector<4x256xbf16>
    %c1_32 = arith.constant 1 : index
    %c0_33 = arith.constant 0 : index
    %c0_34 = arith.constant 0 : index
    %c0_35 = arith.constant 0 : index
    %57 = vector.load %arg2[%c1_32, %c0_33, %c0_34, %c0_35] : memref<3x3x8x4xbf16, #tpu.memory_space<vmem>>, vector<1x1x8x4xbf16>
    %58 = vector.shape_cast %57 : vector<1x1x8x4xbf16> to vector<8x4xbf16>
    %cst_36 = arith.constant dense<0.000000e+00> : vector<8x256xf32>
    %59 = tpu.matmul %58, %56, %cst_36 {dimension_numbers = #tpu.dot_dimension_numbers<[1], [0], [0], [1], [0, 0, 1, 1], [], []>} : vector<8x4xbf16>, vector<4x256xbf16>, vector<8x256xf32> -> vector<8x256xf32>
    %60 = arith.addf %53, %59 : vector<8x256xf32>
    %c0_37 = arith.constant 0 : index
    %c128_38 = arith.constant 128 : index
    %61 = vector.load %arg9[%c0_37, %c128_38] : memref<4x512xbf16, #tpu.memory_space<vmem>>, vector<4x256xbf16>
    %c1_39 = arith.constant 1 : index
    %c1_40 = arith.constant 1 : index
    %c0_41 = arith.constant 0 : index
    %c0_42 = arith.constant 0 : index
    %62 = vector.load %arg2[%c1_39, %c1_40, %c0_41, %c0_42] : memref<3x3x8x4xbf16, #tpu.memory_space<vmem>>, vector<1x1x8x4xbf16>
    %63 = vector.shape_cast %62 : vector<1x1x8x4xbf16> to vector<8x4xbf16>
    %cst_43 = arith.constant dense<0.000000e+00> : vector<8x256xf32>
    %64 = tpu.matmul %63, %61, %cst_43 {dimension_numbers = #tpu.dot_dimension_numbers<[1], [0], [0], [1], [0, 0, 1, 1], [], []>} : vector<8x4xbf16>, vector<4x256xbf16>, vector<8x256xf32> -> vector<8x256xf32>
    %65 = arith.addf %60, %64 : vector<8x256xf32>
    %c0_44 = arith.constant 0 : index
    %c129 = arith.constant 129 : index
    %66 = vector.load %arg9[%c0_44, %c129] : memref<4x512xbf16, #tpu.memory_space<vmem>>, vector<4x256xbf16>
    %67 = vector.broadcast %28 : vector<1x256xbf16> to vector<4x256xbf16>
    %68 = arith.mulf %66, %67 : vector<4x256xbf16>
    %c1_45 = arith.constant 1 : index
    %c2_46 = arith.constant 2 : index
    %c0_47 = arith.constant 0 : index
    %c0_48 = arith.constant 0 : index
    %69 = vector.load %arg2[%c1_45, %c2_46, %c0_47, %c0_48] : memref<3x3x8x4xbf16, #tpu.memory_space<vmem>>, vector<1x1x8x4xbf16>
    %70 = vector.shape_cast %69 : vector<1x1x8x4xbf16> to vector<8x4xbf16>
    %cst_49 = arith.constant dense<0.000000e+00> : vector<8x256xf32>
    %71 = tpu.matmul %70, %68, %cst_49 {dimension_numbers = #tpu.dot_dimension_numbers<[1], [0], [0], [1], [0, 0, 1, 1], [], []>} : vector<8x4xbf16>, vector<4x256xbf16>, vector<8x256xf32> -> vector<8x256xf32>
    %72 = arith.addf %65, %71 : vector<8x256xf32>
    %c0_50 = arith.constant 0 : index
    %c143 = arith.constant 143 : index
    %73 = vector.load %arg9[%c0_50, %c143] : memref<4x512xbf16, #tpu.memory_space<vmem>>, vector<4x256xbf16>
    %74 = vector.broadcast %22 : vector<1x256xbf16> to vector<4x256xbf16>
    %75 = arith.mulf %73, %74 : vector<4x256xbf16>
    %c2_51 = arith.constant 2 : index
    %c0_52 = arith.constant 0 : index
    %c0_53 = arith.constant 0 : index
    %c0_54 = arith.constant 0 : index
    %76 = vector.load %arg2[%c2_51, %c0_52, %c0_53, %c0_54] : memref<3x3x8x4xbf16, #tpu.memory_space<vmem>>, vector<1x1x8x4xbf16>
    %77 = vector.shape_cast %76 : vector<1x1x8x4xbf16> to vector<8x4xbf16>
    %cst_55 = arith.constant dense<0.000000e+00> : vector<8x256xf32>
    %78 = tpu.matmul %77, %75, %cst_55 {dimension_numbers = #tpu.dot_dimension_numbers<[1], [0], [0], [1], [0, 0, 1, 1], [], []>} : vector<8x4xbf16>, vector<4x256xbf16>, vector<8x256xf32> -> vector<8x256xf32>
    %79 = arith.addf %72, %78 : vector<8x256xf32>
    %c0_56 = arith.constant 0 : index
    %c144 = arith.constant 144 : index
    %80 = vector.load %arg9[%c0_56, %c144] : memref<4x512xbf16, #tpu.memory_space<vmem>>, vector<4x256xbf16>
    %c2_57 = arith.constant 2 : index
    %c1_58 = arith.constant 1 : index
    %c0_59 = arith.constant 0 : index
    %c0_60 = arith.constant 0 : index
    %81 = vector.load %arg2[%c2_57, %c1_58, %c0_59, %c0_60] : memref<3x3x8x4xbf16, #tpu.memory_space<vmem>>, vector<1x1x8x4xbf16>
    %82 = vector.shape_cast %81 : vector<1x1x8x4xbf16> to vector<8x4xbf16>
    %cst_61 = arith.constant dense<0.000000e+00> : vector<8x256xf32>
    %83 = tpu.matmul %82, %80, %cst_61 {dimension_numbers = #tpu.dot_dimension_numbers<[1], [0], [0], [1], [0, 0, 1, 1], [], []>} : vector<8x4xbf16>, vector<4x256xbf16>, vector<8x256xf32> -> vector<8x256xf32>
    %84 = arith.addf %79, %83 : vector<8x256xf32>
    %c0_62 = arith.constant 0 : index
    %c145 = arith.constant 145 : index
    %85 = vector.load %arg9[%c0_62, %c145] : memref<4x512xbf16, #tpu.memory_space<vmem>>, vector<4x256xbf16>
    %86 = vector.broadcast %28 : vector<1x256xbf16> to vector<4x256xbf16>
    %87 = arith.mulf %85, %86 : vector<4x256xbf16>
    %c2_63 = arith.constant 2 : index
    %c2_64 = arith.constant 2 : index
    %c0_65 = arith.constant 0 : index
    %c0_66 = arith.constant 0 : index
    %88 = vector.load %arg2[%c2_63, %c2_64, %c0_65, %c0_66] : memref<3x3x8x4xbf16, #tpu.memory_space<vmem>>, vector<1x1x8x4xbf16>
    %89 = vector.shape_cast %88 : vector<1x1x8x4xbf16> to vector<8x4xbf16>
    %cst_67 = arith.constant dense<0.000000e+00> : vector<8x256xf32>
    %90 = tpu.matmul %89, %87, %cst_67 {dimension_numbers = #tpu.dot_dimension_numbers<[1], [0], [0], [1], [0, 0, 1, 1], [], []>} : vector<8x4xbf16>, vector<4x256xbf16>, vector<8x256xf32> -> vector<8x256xf32>
    %91 = arith.addf %84, %90 : vector<8x256xf32>
    %c0_68 = arith.constant 0 : index
    %c0_69 = arith.constant 0 : index
    %92 = vector.load %arg3[%c0_68, %c0_69] : memref<8x1xf32, #tpu.memory_space<vmem>>, vector<8x1xf32>
    %c0_70 = arith.constant 0 : index
    %c0_71 = arith.constant 0 : index
    %93 = vector.load %arg4[%c0_70, %c0_71] : memref<8x1xf32, #tpu.memory_space<vmem>>, vector<8x1xf32>
    %94 = vector.shape_cast %91 : vector<8x256xf32> to vector<1x8x256xf32>
    %cst_72 = arith.constant dense<0.000000e+00> : vector<1xf32>
    %95 = vector.multi_reduction <add>, %94, %cst_72 [1, 2] : vector<1x8x256xf32> to vector<1xf32>
    %96 = vector.shape_cast %95 : vector<1xf32> to vector<1x1x1xf32>
    %97 = vector.extract %96[0, 0, 0] : f32 from vector<1x1x1xf32>
    %98 = arith.mulf %91, %91 : vector<8x256xf32>
    %99 = vector.shape_cast %98 : vector<8x256xf32> to vector<1x8x256xf32>
    %cst_73 = arith.constant dense<0.000000e+00> : vector<1xf32>
    %100 = vector.multi_reduction <add>, %99, %cst_73 [1, 2] : vector<1x8x256xf32> to vector<1xf32>
    %101 = vector.shape_cast %100 : vector<1xf32> to vector<1x1x1xf32>
    %102 = vector.extract %101[0, 0, 0] : f32 from vector<1x1x1xf32>
    %cst_74 = arith.constant 2.048000e+03 : f32
    %103 = arith.divf %97, %cst_74 : f32
    %cst_75 = arith.constant 2.048000e+03 : f32
    %104 = arith.divf %102, %cst_75 : f32
    %105 = arith.mulf %103, %103 : f32
    %106 = arith.subf %104, %105 : f32
    %cst_76 = arith.constant 0.000000e+00 : f32
    %107 = arith.maximumf %106, %cst_76 : f32
    %108 = vector.broadcast %103 : f32 to vector<8x256xf32>
    %109 = arith.subf %91, %108 : vector<8x256xf32>
    %cst_77 = arith.constant 9.99999974E-6 : f32
    %110 = arith.addf %107, %cst_77 : f32
    %111 = math.rsqrt %110 : f32
    %112 = vector.broadcast %111 : f32 to vector<8x256xf32>
    %113 = arith.mulf %109, %112 : vector<8x256xf32>
    %114 = vector.broadcast %92 : vector<8x1xf32> to vector<8x256xf32>
    %115 = arith.mulf %113, %114 : vector<8x256xf32>
    %116 = vector.broadcast %93 : vector<8x1xf32> to vector<8x256xf32>
    %117 = arith.addf %115, %116 : vector<8x256xf32>
    %cst_78 = arith.constant 5.000000e-01 : f32
    %118 = vector.broadcast %cst_78 : f32 to vector<8x256xf32>
    %119 = arith.mulf %118, %117 : vector<8x256xf32>
    %cst_79 = arith.constant 4.471500e-02 : f32
    %120 = vector.broadcast %cst_79 : f32 to vector<8x256xf32>
    %121 = arith.mulf %120, %117 : vector<8x256xf32>
    %122 = arith.mulf %121, %117 : vector<8x256xf32>
    %123 = arith.mulf %122, %117 : vector<8x256xf32>
    %124 = arith.addf %117, %123 : vector<8x256xf32>
    %cst_80 = arith.constant 0.797884583 : f32
    %125 = vector.broadcast %cst_80 : f32 to vector<8x256xf32>
    %126 = arith.mulf %125, %124 : vector<8x256xf32>
    %127 = math.tanh %126 : vector<8x256xf32>
    %cst_81 = arith.constant 1.000000e+00 : f32
    %128 = vector.broadcast %cst_81 : f32 to vector<8x256xf32>
    %129 = arith.addf %128, %127 : vector<8x256xf32>
    %130 = arith.mulf %119, %129 : vector<8x256xf32>
    %cst_82 = arith.constant 0.000000e+00 : bf16
    %131 = vector.broadcast %cst_82 : bf16 to vector<8x128xbf16>
    %c0_83 = arith.constant 0 : index
    %c0_84 = arith.constant 0 : index
    %132 = vector.load %arg10[%c0_83, %c0_84] : memref<8x512xbf16, #tpu.memory_space<vmem>>, vector<8x128xbf16>
    tpu.vector_store %arg10[%c0_83, %c0_84], %131 {strides = array<i32>} : memref<8x512xbf16, #tpu.memory_space<vmem>>, vector<8x128xbf16>,
    %cst_85 = arith.constant 0.000000e+00 : bf16
    %133 = vector.broadcast %cst_85 : bf16 to vector<8x128xbf16>
    %c0_86 = arith.constant 0 : index
    %c384_87 = arith.constant 384 : index
    %134 = vector.load %arg10[%c0_86, %c384_87] : memref<8x512xbf16, #tpu.memory_space<vmem>>, vector<8x128xbf16>
    tpu.vector_store %arg10[%c0_86, %c384_87], %133 {strides = array<i32>} : memref<8x512xbf16, #tpu.memory_space<vmem>>, vector<8x128xbf16>,
    %135 = arith.truncf %130 : vector<8x256xf32> to vector<8x256xbf16>
    %c0_88 = arith.constant 0 : index
    %c128_89 = arith.constant 128 : index
    %136 = vector.load %arg10[%c0_88, %c128_89] : memref<8x512xbf16, #tpu.memory_space<vmem>>, vector<8x256xbf16>
    tpu.vector_store %arg10[%c0_88, %c128_89], %135 {strides = array<i32>} : memref<8x512xbf16, #tpu.memory_space<vmem>>, vector<8x256xbf16>,
    %c0_90 = arith.constant 0 : index
    %c111_91 = arith.constant 111 : index
    %137 = vector.load %arg10[%c0_90, %c111_91] : memref<8x512xbf16, #tpu.memory_space<vmem>>, vector<8x256xbf16>
    %138 = vector.broadcast %22 : vector<1x256xbf16> to vector<8x256xbf16>
    %139 = arith.mulf %137, %138 : vector<8x256xbf16>
    %c0_92 = arith.constant 0 : index
    %c0_93 = arith.constant 0 : index
    %c0_94 = arith.constant 0 : index
    %c0_95 = arith.constant 0 : index
    %140 = vector.load %arg5[%c0_92, %c0_93, %c0_94, %c0_95] : memref<3x3x8x8xbf16, #tpu.memory_space<vmem>>, vector<1x1x8x8xbf16>
    %141 = vector.shape_cast %140 : vector<1x1x8x8xbf16> to vector<8x8xbf16>
    %cst_96 = arith.constant dense<0.000000e+00> : vector<8x256xf32>
    %142 = tpu.matmul %141, %139, %cst_96 {dimension_numbers = #tpu.dot_dimension_numbers<[1], [0], [0], [1], [0, 0, 1, 1], [], []>} : vector<8x8xbf16>, vector<8x256xbf16>, vector<8x256xf32> -> vector<8x256xf32>
    %c0_97 = arith.constant 0 : index
    %c112_98 = arith.constant 112 : index
    %143 = vector.load %arg10[%c0_97, %c112_98] : memref<8x512xbf16, #tpu.memory_space<vmem>>, vector<8x256xbf16>
    %c0_99 = arith.constant 0 : index
    %c1_100 = arith.constant 1 : index
    %c0_101 = arith.constant 0 : index
    %c0_102 = arith.constant 0 : index
    %144 = vector.load %arg5[%c0_99, %c1_100, %c0_101, %c0_102] : memref<3x3x8x8xbf16, #tpu.memory_space<vmem>>, vector<1x1x8x8xbf16>
    %145 = vector.shape_cast %144 : vector<1x1x8x8xbf16> to vector<8x8xbf16>
    %cst_103 = arith.constant dense<0.000000e+00> : vector<8x256xf32>
    %146 = tpu.matmul %145, %143, %cst_103 {dimension_numbers = #tpu.dot_dimension_numbers<[1], [0], [0], [1], [0, 0, 1, 1], [], []>} : vector<8x8xbf16>, vector<8x256xbf16>, vector<8x256xf32> -> vector<8x256xf32>
    %147 = arith.addf %142, %146 : vector<8x256xf32>
    %c0_104 = arith.constant 0 : index
    %c113_105 = arith.constant 113 : index
    %148 = vector.load %arg10[%c0_104, %c113_105] : memref<8x512xbf16, #tpu.memory_space<vmem>>, vector<8x256xbf16>
    %149 = vector.broadcast %28 : vector<1x256xbf16> to vector<8x256xbf16>
    %150 = arith.mulf %148, %149 : vector<8x256xbf16>
    %c0_106 = arith.constant 0 : index
    %c2_107 = arith.constant 2 : index
    %c0_108 = arith.constant 0 : index
    %c0_109 = arith.constant 0 : index
    %151 = vector.load %arg5[%c0_106, %c2_107, %c0_108, %c0_109] : memref<3x3x8x8xbf16, #tpu.memory_space<vmem>>, vector<1x1x8x8xbf16>
    %152 = vector.shape_cast %151 : vector<1x1x8x8xbf16> to vector<8x8xbf16>
    %cst_110 = arith.constant dense<0.000000e+00> : vector<8x256xf32>
    %153 = tpu.matmul %152, %150, %cst_110 {dimension_numbers = #tpu.dot_dimension_numbers<[1], [0], [0], [1], [0, 0, 1, 1], [], []>} : vector<8x8xbf16>, vector<8x256xbf16>, vector<8x256xf32> -> vector<8x256xf32>
    %154 = arith.addf %147, %153 : vector<8x256xf32>
    %c0_111 = arith.constant 0 : index
    %c127_112 = arith.constant 127 : index
    %155 = vector.load %arg10[%c0_111, %c127_112] : memref<8x512xbf16, #tpu.memory_space<vmem>>, vector<8x256xbf16>
    %156 = vector.broadcast %22 : vector<1x256xbf16> to vector<8x256xbf16>
    %157 = arith.mulf %155, %156 : vector<8x256xbf16>
    %c1_113 = arith.constant 1 : index
    %c0_114 = arith.constant 0 : index
    %c0_115 = arith.constant 0 : index
    %c0_116 = arith.constant 0 : index
    %158 = vector.load %arg5[%c1_113, %c0_114, %c0_115, %c0_116] : memref<3x3x8x8xbf16, #tpu.memory_space<vmem>>, vector<1x1x8x8xbf16>
    %159 = vector.shape_cast %158 : vector<1x1x8x8xbf16> to vector<8x8xbf16>
    %cst_117 = arith.constant dense<0.000000e+00> : vector<8x256xf32>
    %160 = tpu.matmul %159, %157, %cst_117 {dimension_numbers = #tpu.dot_dimension_numbers<[1], [0], [0], [1], [0, 0, 1, 1], [], []>} : vector<8x8xbf16>, vector<8x256xbf16>, vector<8x256xf32> -> vector<8x256xf32>
    %161 = arith.addf %154, %160 : vector<8x256xf32>
    %c0_118 = arith.constant 0 : index
    %c128_119 = arith.constant 128 : index
    %162 = vector.load %arg10[%c0_118, %c128_119] : memref<8x512xbf16, #tpu.memory_space<vmem>>, vector<8x256xbf16>
    %c1_120 = arith.constant 1 : index
    %c1_121 = arith.constant 1 : index
    %c0_122 = arith.constant 0 : index
    %c0_123 = arith.constant 0 : index
    %163 = vector.load %arg5[%c1_120, %c1_121, %c0_122, %c0_123] : memref<3x3x8x8xbf16, #tpu.memory_space<vmem>>, vector<1x1x8x8xbf16>
    %164 = vector.shape_cast %163 : vector<1x1x8x8xbf16> to vector<8x8xbf16>
    %cst_124 = arith.constant dense<0.000000e+00> : vector<8x256xf32>
    %165 = tpu.matmul %164, %162, %cst_124 {dimension_numbers = #tpu.dot_dimension_numbers<[1], [0], [0], [1], [0, 0, 1, 1], [], []>} : vector<8x8xbf16>, vector<8x256xbf16>, vector<8x256xf32> -> vector<8x256xf32>
    %166 = arith.addf %161, %165 : vector<8x256xf32>
    %c0_125 = arith.constant 0 : index
    %c129_126 = arith.constant 129 : index
    %167 = vector.load %arg10[%c0_125, %c129_126] : memref<8x512xbf16, #tpu.memory_space<vmem>>, vector<8x256xbf16>
    %168 = vector.broadcast %28 : vector<1x256xbf16> to vector<8x256xbf16>
    %169 = arith.mulf %167, %168 : vector<8x256xbf16>
    %c1_127 = arith.constant 1 : index
    %c2_128 = arith.constant 2 : index
    %c0_129 = arith.constant 0 : index
    %c0_130 = arith.constant 0 : index
    %170 = vector.load %arg5[%c1_127, %c2_128, %c0_129, %c0_130] : memref<3x3x8x8xbf16, #tpu.memory_space<vmem>>, vector<1x1x8x8xbf16>
    %171 = vector.shape_cast %170 : vector<1x1x8x8xbf16> to vector<8x8xbf16>
    %cst_131 = arith.constant dense<0.000000e+00> : vector<8x256xf32>
    %172 = tpu.matmul %171, %169, %cst_131 {dimension_numbers = #tpu.dot_dimension_numbers<[1], [0], [0], [1], [0, 0, 1, 1], [], []>} : vector<8x8xbf16>, vector<8x256xbf16>, vector<8x256xf32> -> vector<8x256xf32>
    %173 = arith.addf %166, %172 : vector<8x256xf32>
    %c0_132 = arith.constant 0 : index
    %c143_133 = arith.constant 143 : index
    %174 = vector.load %arg10[%c0_132, %c143_133] : memref<8x512xbf16, #tpu.memory_space<vmem>>, vector<8x256xbf16>
    %175 = vector.broadcast %22 : vector<1x256xbf16> to vector<8x256xbf16>
    %176 = arith.mulf %174, %175 : vector<8x256xbf16>
    %c2_134 = arith.constant 2 : index
    %c0_135 = arith.constant 0 : index
    %c0_136 = arith.constant 0 : index
    %c0_137 = arith.constant 0 : index
    %177 = vector.load %arg5[%c2_134, %c0_135, %c0_136, %c0_137] : memref<3x3x8x8xbf16, #tpu.memory_space<vmem>>, vector<1x1x8x8xbf16>
    %178 = vector.shape_cast %177 : vector<1x1x8x8xbf16> to vector<8x8xbf16>
    %cst_138 = arith.constant dense<0.000000e+00> : vector<8x256xf32>
    %179 = tpu.matmul %178, %176, %cst_138 {dimension_numbers = #tpu.dot_dimension_numbers<[1], [0], [0], [1], [0, 0, 1, 1], [], []>} : vector<8x8xbf16>, vector<8x256xbf16>, vector<8x256xf32> -> vector<8x256xf32>
    %180 = arith.addf %173, %179 : vector<8x256xf32>
    %c0_139 = arith.constant 0 : index
    %c144_140 = arith.constant 144 : index
    %181 = vector.load %arg10[%c0_139, %c144_140] : memref<8x512xbf16, #tpu.memory_space<vmem>>, vector<8x256xbf16>
    %c2_141 = arith.constant 2 : index
    %c1_142 = arith.constant 1 : index
    %c0_143 = arith.constant 0 : index
    %c0_144 = arith.constant 0 : index
    %182 = vector.load %arg5[%c2_141, %c1_142, %c0_143, %c0_144] : memref<3x3x8x8xbf16, #tpu.memory_space<vmem>>, vector<1x1x8x8xbf16>
    %183 = vector.shape_cast %182 : vector<1x1x8x8xbf16> to vector<8x8xbf16>
    %cst_145 = arith.constant dense<0.000000e+00> : vector<8x256xf32>
    %184 = tpu.matmul %183, %181, %cst_145 {dimension_numbers = #tpu.dot_dimension_numbers<[1], [0], [0], [1], [0, 0, 1, 1], [], []>} : vector<8x8xbf16>, vector<8x256xbf16>, vector<8x256xf32> -> vector<8x256xf32>
    %185 = arith.addf %180, %184 : vector<8x256xf32>
    %c0_146 = arith.constant 0 : index
    %c145_147 = arith.constant 145 : index
    %186 = vector.load %arg10[%c0_146, %c145_147] : memref<8x512xbf16, #tpu.memory_space<vmem>>, vector<8x256xbf16>
    %187 = vector.broadcast %28 : vector<1x256xbf16> to vector<8x256xbf16>
    %188 = arith.mulf %186, %187 : vector<8x256xbf16>
    %c2_148 = arith.constant 2 : index
    %c2_149 = arith.constant 2 : index
    %c0_150 = arith.constant 0 : index
    %c0_151 = arith.constant 0 : index
    %189 = vector.load %arg5[%c2_148, %c2_149, %c0_150, %c0_151] : memref<3x3x8x8xbf16, #tpu.memory_space<vmem>>, vector<1x1x8x8xbf16>
    %190 = vector.shape_cast %189 : vector<1x1x8x8xbf16> to vector<8x8xbf16>
    %cst_152 = arith.constant dense<0.000000e+00> : vector<8x256xf32>
    %191 = tpu.matmul %190, %188, %cst_152 {dimension_numbers = #tpu.dot_dimension_numbers<[1], [0], [0], [1], [0, 0, 1, 1], [], []>} : vector<8x8xbf16>, vector<8x256xbf16>, vector<8x256xf32> -> vector<8x256xf32>
    %192 = arith.addf %185, %191 : vector<8x256xf32>
    %c0_153 = arith.constant 0 : index
    %c0_154 = arith.constant 0 : index
    %193 = vector.load %arg6[%c0_153, %c0_154] : memref<8x1xf32, #tpu.memory_space<vmem>>, vector<8x1xf32>
    %c0_155 = arith.constant 0 : index
    %c0_156 = arith.constant 0 : index
    %194 = vector.load %arg7[%c0_155, %c0_156] : memref<8x1xf32, #tpu.memory_space<vmem>>, vector<8x1xf32>
    %195 = vector.shape_cast %192 : vector<8x256xf32> to vector<1x8x256xf32>
    %cst_157 = arith.constant dense<0.000000e+00> : vector<1xf32>
    %196 = vector.multi_reduction <add>, %195, %cst_157 [1, 2] : vector<1x8x256xf32> to vector<1xf32>
    %197 = vector.shape_cast %196 : vector<1xf32> to vector<1x1x1xf32>
    %198 = vector.extract %197[0, 0, 0] : f32 from vector<1x1x1xf32>
    %199 = arith.mulf %192, %192 : vector<8x256xf32>
    %200 = vector.shape_cast %199 : vector<8x256xf32> to vector<1x8x256xf32>
    %cst_158 = arith.constant dense<0.000000e+00> : vector<1xf32>
    %201 = vector.multi_reduction <add>, %200, %cst_158 [1, 2] : vector<1x8x256xf32> to vector<1xf32>
    %202 = vector.shape_cast %201 : vector<1xf32> to vector<1x1x1xf32>
    %203 = vector.extract %202[0, 0, 0] : f32 from vector<1x1x1xf32>
    %cst_159 = arith.constant 2.048000e+03 : f32
    %204 = arith.divf %198, %cst_159 : f32
    %cst_160 = arith.constant 2.048000e+03 : f32
    %205 = arith.divf %203, %cst_160 : f32
    %206 = arith.mulf %204, %204 : f32
    %207 = arith.subf %205, %206 : f32
    %cst_161 = arith.constant 0.000000e+00 : f32
    %208 = arith.maximumf %207, %cst_161 : f32
    %209 = vector.broadcast %204 : f32 to vector<8x256xf32>
    %210 = arith.subf %192, %209 : vector<8x256xf32>
    %cst_162 = arith.constant 9.99999974E-6 : f32
    %211 = arith.addf %208, %cst_162 : f32
    %212 = math.rsqrt %211 : f32
    %213 = vector.broadcast %212 : f32 to vector<8x256xf32>
    %214 = arith.mulf %210, %213 : vector<8x256xf32>
    %215 = vector.broadcast %193 : vector<8x1xf32> to vector<8x256xf32>
    %216 = arith.mulf %214, %215 : vector<8x256xf32>
    %217 = vector.broadcast %194 : vector<8x1xf32> to vector<8x256xf32>
    %218 = arith.addf %216, %217 : vector<8x256xf32>
    %c0_163 = arith.constant 0 : index
    %c0_164 = arith.constant 0 : index
    %c0_165 = arith.constant 0 : index
    %219 = vector.load %arg8[%c0_163, %c0_164, %c0_165] : memref<1x8x256xf32, #tpu.memory_space<vmem>>, vector<1x8x256xf32>
    %220 = vector.shape_cast %219 : vector<1x8x256xf32> to vector<8x256xf32>
    %221 = vector.shape_cast %218 : vector<8x256xf32> to vector<1x8x256xf32>
    tpu.vector_store %arg8[%c0_163, %c0_164, %c0_165], %221 {strides = array<i32>} : memref<1x8x256xf32, #tpu.memory_space<vmem>>, vector<1x8x256xf32>,
    return
  }
  func.func @transform_0(%arg0: i32) -> (i32, i32, i32) {
    %c0_i32 = arith.constant 0 : i32
    %c0_i32_0 = arith.constant 0 : i32
    %c0_i32_1 = arith.constant 0 : i32
    return %arg0, %c0_i32, %c0_i32_0 : i32, i32, i32
  }
  func.func @transform_1(%arg0: i32) -> (i32, i32, i32, i32) {
    %c0_i32 = arith.constant 0 : i32
    %c0_i32_0 = arith.constant 0 : i32
    %c0_i32_1 = arith.constant 0 : i32
    %c0_i32_2 = arith.constant 0 : i32
    %c0_i32_3 = arith.constant 0 : i32
    return %c0_i32, %c0_i32_0, %c0_i32_1, %c0_i32_2 : i32, i32, i32, i32
  }
  func.func @transform_2(%arg0: i32) -> (i32, i32) {
    %c0_i32 = arith.constant 0 : i32
    %c0_i32_0 = arith.constant 0 : i32
    %c0_i32_1 = arith.constant 0 : i32
    return %c0_i32, %c0_i32_0 : i32, i32
  }
  func.func @transform_3(%arg0: i32) -> (i32, i32) {
    %c0_i32 = arith.constant 0 : i32
    %c0_i32_0 = arith.constant 0 : i32
    %c0_i32_1 = arith.constant 0 : i32
    return %c0_i32, %c0_i32_0 : i32, i32
  }
  func.func @transform_4(%arg0: i32) -> (i32, i32, i32, i32) {
    %c0_i32 = arith.constant 0 : i32
    %c0_i32_0 = arith.constant 0 : i32
    %c0_i32_1 = arith.constant 0 : i32
    %c0_i32_2 = arith.constant 0 : i32
    %c0_i32_3 = arith.constant 0 : i32
    return %c0_i32, %c0_i32_0, %c0_i32_1, %c0_i32_2 : i32, i32, i32, i32
  }
  func.func @transform_5(%arg0: i32) -> (i32, i32) {
    %c0_i32 = arith.constant 0 : i32
    %c0_i32_0 = arith.constant 0 : i32
    %c0_i32_1 = arith.constant 0 : i32
    return %c0_i32, %c0_i32_0 : i32, i32
  }
  func.func @transform_6(%arg0: i32) -> (i32, i32) {
    %c0_i32 = arith.constant 0 : i32
    %c0_i32_0 = arith.constant 0 : i32
    %c0_i32_1 = arith.constant 0 : i32
    return %c0_i32, %c0_i32_0 : i32, i32
  }
  func.func @transform_7(%arg0: i32) -> (i32, i32, i32) {
    %c0_i32 = arith.constant 0 : i32
    %c0_i32_0 = arith.constant 0 : i32
    %c0_i32_1 = arith.constant 0 : i32
    return %arg0, %c0_i32, %c0_i32_0 : i32, i32, i32
  }
}

</mosaic_0001>

<bundles_post_ra>
// kernel: tpu_custom_call.1
= control target key start
LH: loop header
LB: loop body
LE: loop exit
PB: predicated region body
PF: predicated region fallthrough
CT: control target
= control target key end

     0   :  { %12 = vsyncpa [#allocation5], 0  ;;  %s2751_s0 = inlined_call_operand.vmem [shape: bf16[2,4,256], index: 0, kind: input, shape index: {}]   ;;  %s2752_s1 = inlined_call_operand.vmem [shape: bf16[3,3,8,4], index: 1, kind: input, shape index: {}]   ;;  %s2753_s2 = inlined_call_operand.vmem [shape: f32[8,1], index: 2, kind: input, shape index: {}]   ;;  %s2754_s3 = inlined_call_operand.vmem [shape: f32[8,1], index: 3, kind: input, shape index: {}]   ;;  %s2755_s4 = inlined_call_operand.vmem [shape: bf16[3,3,8,8], index: 4, kind: input, shape index: {}]   ;;  %s2756_s5 = inlined_call_operand.vmem [shape: f32[8,1], index: 5, kind: input, shape index: {}]   ;;  %s2757_s6 = inlined_call_operand.vmem [shape: f32[8,1], index: 6, kind: input, shape index: {}]   ;;  %s2758_s7 = inlined_call_operand.hbm [shape: f32[2,8,256], index: 7, kind: output, shape index: {}]  }
   0x1   :  { %14 = vsyncpa [#allocation5 + $0x1], 0  ;;  %s2341_s24 = smov 0   ;;  %s2343_s25 = smov 0  }
   0x2   :  { %s2345_s26 = smov 0   ;;  %s2347_s27 = smov 0  }
   0x3 LB: > { %s2362_s28 = sadd.s32 4294967295, %s2286_s27   ;;  %s1979_s29 = sadd.s32 4294967294, %s2286_s27   ;;  %s2286_s27 = sphi %s2347_s27, %s2776_s27   ;;  %s2282_s26 = sphi %s2345_s26, %s2775_s26   ;;  %s2278_s25 = sphi %s2343_s25, %s2774_s25   ;;  %s2274_s24 = sphi %s2341_s24, %s2773_s24  }
   0x4   : > { %s2366_s30 = sadd.s32 1, %s2286_s27   ;;  %s179_s8 = sadd.s32 1, %s2282_s26 }
   0x5   : > { %s176_s9 = ssub.s32 %s2286_s27, %s2366_s30  ;;  %p189_p0 = scmp.ne.s32.totalorder %s2282_s26, %s2278_s25 }
   0x6   : > { %p177_p1 = scmp.eq.s32.totalorder %s176_s9, 0  ;;  %p190_p2 = scmp.eq.s32.totalorder %s2362_s28, 1 }
   0x7   : > { %p195_p3 = scmp.ne.s32.totalorder %s2278_s25, %s2274_s24  ;;  %p196_p4 = scmp.eq.s32.totalorder %s1979_s29, 1 }
   0x8   : > { %s2377_s10 = scalar_select %p177_p1, %s2282_s26, %s179_s8  }
   0x9   : > { %p2379_p5 = por %p190_p2, %p189_p0  ;;  %p2383_p6 = por %p196_p4, %p195_p3 }
   0xa   : > { %p1982_p7 = scmp.ge.s32.totalorder %s2286_s27, 1  ;;  %p240_p8 = scmp.lt.s32.totalorder %s2286_s27, 3 }
   0xc   : > { %p241_p9 = pnand %p1982_p7, %p240_p8 }
   0xd   : > { %v278_v0 = vlaneseq (!%p241_p9)  ;;  %v2288_v1 = vmov (!%p241_p9), 1983009808   ;;  %v2289_v3 = vmov (!%p241_p9), 0   ;;  %p272_p10 = scmp.lt.s32.totalorder (!%p241_p9), %s2362_s28, 1  ;;  %v2290_v10 = vmov (!%p241_p9), 0.0   ;;  %s2759_s18 = smov (!%p241_p9), 111  }
   0xe   : > { %244 = sbr.rel (%p241_p9) target bundleno = 1733 (0x6c5), region = 48  ;;  %v326_v2 = vunpack.c.l.s4 (!%p241_p9), %v2288_v1  ;;  %317 = vst [vmem:[#allocation2] sm:$0x3] (!%p241_p9), %v2289_v3  ;;  %318 = vst [vmem:[#allocation2 + $0x6] sm:$0x3] (!%p241_p9), %v2289_v3  ;;  %411 = vmatprep.mubr.bf16.mxu0 (!%p241_p9), %v2289_v3  ;;  %2207 = vset.pattern.permute.xlu0 (!%p241_p9), %v2289_v3  ;;  %s2765_s19 = smov (!%p241_p9), 127  }
   0xf   : > { %1160 = vst [vmem:[#allocation3] sm:$0xf] (!%p241_p9), %v2289_v3  ;;  %1161 = vst [vmem:[#allocation3 + $0xc] sm:$0xf] (!%p241_p9), %v2289_v3  ;;  %v279_v4 = vand.u32 (!%p241_p9), 127, %v278_v0  ;;  %2208 = vset.pattern.permute.xlu1 (!%p241_p9), %v2289_v3  ;;  %1246 = vmatprep.mubr.bf16.mxu1 (!%p241_p9), %v2289_v3  ;;  %v329_v8 = vshrl.u32 (!%p241_p9), %v278_v0, 7 }
  0x10   : > { %v327_v7 = vunpack.c.0.s8 (!%p241_p9), %v326_v2  ;;  %s2763_s20 = smov (!%p241_p9), 113   ;;  %s2294_s21 = smov (!%p241_p9), 1   ;;  %vm335_vm4 = vcmask (!%p241_p9), 908288   ;;  %vm510_vm5 = vcmask (!%p241_p9), 924672   ;;  %vm365_vm6 = vcmask (!%p241_p9), 130048  }
  0x11   : > { %v280_v5 = vadd.s32 (!%p241_p9), 128, %v279_v4  ;;  %v285_v6 = vand.u32 (!%p241_p9), 15, %v279_v4  ;;  %s2295_s22 = smov (!%p241_p9), 16   ;;  %s2296_s23 = smov (!%p241_p9), 15   ;;  %vm598_vm7 = vcmask (!%p241_p9), 1039360   ;;  %vm372_vm8 = vcmask (!%p241_p9), 1041408  }
  0x12   : > { %v2402_v13 = vsub.s32 (!%p241_p9), %v327_v7, %v329_v8  ;;  %s2297_s29 = smov (!%p241_p9), 17   ;;  %vm627_vm9 = vcmask (!%p241_p9), 7168   ;;  %v1987_v55 = vld [vmem:[%s2752_s1 + $0x4] sm:$0xf] (!%p241_p9)  ;;  %vm368_vm10 = vcmask (!%p241_p9), 31744   ;;  %vm539_vm11 = vcmask (!%p241_p9), 121856  }
  0x13   : > { %v292_v9 = vand.u32 (!%p241_p9), 15, %v280_v5  ;;  %vm305_vm0 = vcmp.ne.s32.totalorder (!%p241_p9), %v285_v6, 0  ;;  %vm311_vm1 = vcmp.ne.s32.totalorder (!%p241_p9), %v285_v6, 15  ;;  %vm443_vm12 = vcmask (!%p241_p9), 138240  }
  0x14   : > { %v307_v11 = vsel (!%p241_p9), %vm305_vm0, 1.0, %v2290_v10  ;;  %v313_v12 = vsel (!%p241_p9), %vm311_vm1, 1.0, %v2290_v10  ;;  %vm944_vm13 = vcmask (!%p241_p9), 916480   ;;  %vm1207_vm14 = vcmask (!%p241_p9), 1043456  }
  0x15   : > { %s273_s13 = scalar_select %p272_p10, %s2362_s28, 1  ;;  %vm306_vm2 = vcmp.ne.s32.totalorder %v292_v9, 0  ;;  %vm312_vm3 = vcmp.ne.s32.totalorder %v292_v9, 15  ;;  %vm1203_vm15 = vcmask 64512  }
  0x16   : > { %v308_v15 = vsel %vm306_vm2, 1.0, %v2290_v10  ;;  %v314_v16 = vsel %vm312_vm3, 1.0, %v2290_v10 }
  0x17   : > { %s2075_s14 = sshll.u32 %s273_s13, 2  ;;  %v2404_v17 = vpack.c.bf16 %v308_v15, %v307_v11  ;;  %v2406_v18 = vpack.c.bf16 %v314_v16, %v313_v12  ;;  %s2761_s13 = smov 112  }
  0x18   : > { %s276_s17 = scalar_lea.vmem %s2751_s0, %s2075_s14 }
  0x19   : > { %v319_v14 = vld [vmem:[%s276_s17] sm:$0xf]  ;;  %v331_v19 = vrot.slane %v2404_v17, %v2402_v13  ;;  %v2413_v20 = vrot.slane %v2406_v18, %v2402_v13 }
  0x1a   : > { %320 = vst [vmem:[#allocation2 + $0x2] sm:$0xf] %v319_v14 }
  0x1b   : > { %332 = vrot.lane.b32.xlu0 %v331_v19, %s2759_s18  ;;  %595 = vrot.lane.b32.xlu1 %v331_v19, %s2765_s19 }
  0x1f   : > { %507 = vrot.lane.b32.xlu0 %v2413_v20, %s2763_s20  ;;  %747 = vrot.lane.b32.xlu1 %v2413_v20, %s2294_s21 }
  0x21   : > { %v321_v21 = vld [vmem:[#allocation2] sm:$0x3f] }
  0x22   : > { %v350_v22 = vrot.slane %v321_v21, %v2402_v13  ;;  %v343_v23 = vcombine.high %v321_v21, %v321_v21  ;;  %v496_v33 = vld [vmem:[#allocation2] sm:$0x3f] }
  0x23   : > { %v594_v46 = vld [vmem:[#allocation2] sm:$0x3f] }
  0x24   : > { %v358_v24 = vcombine.high %v350_v22, %v350_v22  ;;  %359 = vrot.lane.b32.xlu0 %v350_v22, %s2295_s22  ;;  %v357_v25 = vrot.slane %v343_v23, %v2402_v13  ;;  %v746_v58 = vld [vmem:[#allocation2 + $0x2] sm:$0x3f] }
  0x25   : > { %v832_v2 = vld [vmem:[#allocation2 + $0x2] sm:$0x3f] }
  0x26   : > { %361 = vrot.lane.b32.xlu1 %v358_v24, %s2295_s22  ;;  %v918_v14 = vld [vmem:[#allocation2 + $0x2] sm:$0x3f] }
  0x27   : > { %v929_v16 = vrot.slane %v918_v14, %v2402_v13 }
  0x28   : > { %363 = vrot.lane.b32.xlu0 %v357_v25, %s2295_s22 }
  0x2a   : > { %833 = vrot.lane.b32.xlu1 %v331_v19, %s2296_s23  ;;  %v922_v19 = vcombine.high %v918_v14, %v918_v14 }
  0x8d   : > { %v333_v26 = vpop.permute.xlu0 %332  ;;  %v596_v27 = vpop.permute.xlu1 %595 }
  0x8e   : > { %v334_v28 = vrot.slane %v333_v26, 6  ;;  %v597_v38 = vrot.slane %v596_v27, 6 }
  0x90   : > { %v336_v29 = vsel %vm335_vm4, %v334_v28, %v333_v26  ;;  %v599_v47 = vsel %vm598_vm7, %v597_v38, %v596_v27 }
  0x91   : > { %v338_v30 = vmul.bf16 %v336_v29, %v321_v21  ;;  %v508_v31 = vpop.permute.xlu0 %507  ;;  %v748_v32 = vpop.permute.xlu1 %747  ;;  %v601_v54 = vmul.bf16 %v599_v47, %v594_v46  ;;  %v936_v21 = vrot.slane %v922_v19, %v2402_v13  ;;  %v339_v29 = vld [vmem:[%s2752_s1] sm:$0xf]  ;;  %v1993_v47 = vld [vmem:[%s2752_s1 + $0x8] sm:$0xf] }
  0x92   : > { %v509_v34 = vrot.slane %v508_v31, 6  ;;  %v749_v51 = vrot.slane %v748_v32, 6 }
  0x93   : > { %v421_v35 = vcombine.high %v338_v30, %v338_v30  ;;  %v428_v36 = vrot.slane %v338_v30, %v2402_v13  ;;  %v605_v60 = vcombine.high %v601_v54, %v601_v54  ;;  %v612_v61 = vrot.slane %v601_v54, %v2402_v13 }
  0x94   : > { %v511_v37 = vsel %vm510_vm5, %v509_v34, %v508_v31  ;;  %v750_v59 = vsel %vm627_vm9, %v749_v51, %v748_v32 }
  0x95   : > { %v513_v39 = vmul.bf16 %v511_v37, %v496_v33  ;;  %437 = vrot.lane.b32.xlu0 %v428_v36, %s2297_s29  ;;  %v436_v40 = vcombine.high %v428_v36, %v428_v36  ;;  %v435_v44 = vrot.slane %v421_v35, %v2402_v13  ;;  %v620_v63 = vcombine.high %v612_v61, %v612_v61  ;;  %v999_v36 = vld [vmem:[#allocation2 + $0x2] sm:$0x3f] }
  0x96   : > { %v360_v42 = vpop.permute.xlu0 %359  ;;  %v752_v0 = vmul.bf16 %v750_v59, %v746_v58  ;;  %v619_v1 = vrot.slane %v605_v60, %v2402_v13 }
  0x97   : > { %439 = vrot.lane.b32.xlu1 %v436_v40, %s2297_s29  ;;  %v524_v45 = vrot.slane %v513_v39, %v2402_v13  ;;  %v517_v48 = vcombine.high %v513_v39, %v513_v39 }
  0x98   : > { %v362_v41 = vpop.permute.xlu1 %361  ;;  %v756_v5 = vcombine.high %v752_v0, %v752_v0  ;;  %v763_v6 = vrot.slane %v752_v0, %v2402_v13 }
  0x99   : > { %v366_v43 = vsel %vm365_vm6, %v360_v42, %v362_v41  ;;  %441 = vrot.lane.b32.xlu0 %v435_v44, %s2297_s29  ;;  %v532_v53 = vcombine.high %v524_v45, %v524_v45  ;;  %v531_v56 = vrot.slane %v517_v48, %v2402_v13 }
  0x9a   : > { %v364_v49 = vpop.permute.xlu0 %363  ;;  %v374_v50 = vsel %vm372_vm8, %v366_v43, 0  ;;  %v771_v8 = vcombine.high %v763_v6, %v763_v6  ;;  %v770_v9 = vrot.slane %v756_v5, %v2402_v13  ;;  %v2000_v43 = vld.sshfl [vmem:[#allocation2 + $0x2] sm:$0x33 pattern:$0x76325410] }
  0x9b   : > { %v367_v52 = vsel %vm365_vm6, %v362_v41, %v364_v49  ;;  %533 = vrot.lane.b32.xlu1 %v524_v45, %s2296_s23  ;;  %v693_v51 = vcombine.high %v2000_v43, %v2000_v43 }
  0x9c   : > { %1988 = vmatprep.subr.msk.bf16.mxu0 %vm372_vm8, %v367_v52  ;;  %v834_v57 = vpop.permute.xlu1 %833 }
  0x9d   : > { %380 = vmatpush1.bf16.msra.mxu0 %v374_v50  ;;  %535 = vrot.lane.b32.xlu0 %v532_v53, %s2296_s23  ;;  %v835_v62 = vrot.slane %v834_v57, 6 }
  0x9f   : > { %537 = vrot.lane.b32.xlu1 %v531_v56, %s2296_s23  ;;  %v836_v4 = vsel %vm539_vm11, %v835_v62, %v834_v57  ;;  %v1996_v56 = vld [vmem:[%s2752_s1 + $0xc] sm:$0xf]  ;;  %v698_v57 = vsel %vm372_vm8, %v2000_v43, 0  ;;  %v1999_v62 = vld [vmem:[%s2752_s1 + $0x10] sm:$0xf] }
  0xa0   : > { %1989 = vmatmul.mubr.msk.bf16.vlgmr.msra.gmra.mrb[0].mxu0 %vm368_vm10, %v1987_v55  ;;  %v838_v7 = vmul.bf16 %v836_v4, %v832_v2 }
  0xa1   : > { %487 = vmatprep.mubr.bf16.mxu0 %v2289_v3  ;;  %1000 = vrot.lane.b32.xlu0 %v2413_v20, %s2297_s29  ;;  %v937_v20 = vcombine.high %v929_v16, %v929_v16 }
  0xa2   : > { %v842_v10 = vcombine.high %v838_v7, %v838_v7  ;;  %v849_v11 = vrot.slane %v838_v7, %v2402_v13 }
  0xa3   : > { %621 = vrot.lane.b32.xlu1 %v612_v61, %s2294_s21 }
  0xa4   : > { %v857_v12 = vcombine.high %v849_v11, %v849_v11  ;;  %v856_v15 = vrot.slane %v842_v10, %v2402_v13  ;;  %v2006_v10 = vld [vmem:[%s2752_s1 + $0x18] sm:$0xf] }
  0xa5   : > { %623 = vrot.lane.b32.xlu0 %v620_v63, %s2294_s21 }
  0xa7   : > { %625 = vrot.lane.b32.xlu1 %v619_v1, %s2294_s21 }
  0xa9   : > { %772 = vrot.lane.b32.xlu0 %v763_v6, %s2765_s19  ;;  %v2003_v6 = vld [vmem:[%s2752_s1 + $0x14] sm:$0xf] }
  0xab   : > { %774 = vrot.lane.b32.xlu1 %v771_v8, %s2765_s19 }
  0xad   : > { %776 = vrot.lane.b32.xlu0 %v770_v9, %s2765_s19 }
  0xaf   : > { %858 = vrot.lane.b32.xlu1 %v849_v11, %s2763_s20 }
  0xb1   : > { %860 = vrot.lane.b32.xlu0 %v857_v12, %s2763_s20  ;;  %v2009_v12 = vld [vmem:[%s2752_s1 + $0x1c] sm:$0xf] }
  0xb3   : > { %862 = vrot.lane.b32.xlu1 %v856_v15, %s2763_s20 }
  0xb5   : > { %938 = vrot.lane.b32.xlu0 %v929_v16, %s2761_s13 }
  0xb7   : > { %940 = vrot.lane.b32.xlu1 %v937_v20, %s2761_s13 }
  0xb9   : > { %942 = vrot.lane.b32.xlu0 %v936_v21, %s2761_s13 }
 0x107   : > { %v438_v22 = vpop.permute.xlu0 %437 }
 0x109   : > { %v440_v23 = vpop.permute.xlu1 %439 }
 0x10a   : > { %v444_v24 = vsel %vm443_vm12, %v438_v22, %v440_v23  ;;  %v2012_v22 = vld [vmem:[%s2752_s1 + $0x20] sm:$0xf] }
 0x10b   : > { %v442_v25 = vpop.permute.xlu0 %441  ;;  %v450_v27 = vsel %vm372_vm8, %v444_v24, 0 }
 0x10c   : > { %v445_v26 = vsel %vm443_vm12, %v440_v23, %v442_v25 }
 0x10d   : > { %v534_v28 = vpop.permute.xlu1 %533  ;;  %1990 = vmatprep.subr.msk.bf16.mxu0 %vm372_vm8, %v445_v26 }
 0x10e   : > { %456 = vmatpush1.bf16.msra.mxu0 %v450_v27 }
 0x10f   : > { %v536_v30 = vpop.permute.xlu0 %535 }
 0x110   : > { %v540_v31 = vsel %vm539_vm11, %v534_v28, %v536_v30 }
 0x111   : > { %v538_v32 = vpop.permute.xlu1 %537  ;;  %1991 = vmatmul.mubr.msk.bf16.vlgmr.msra.gmra.mrb[0].mxu0 %vm368_vm10, %v339_v29  ;;  %v546_v34 = vsel %vm372_vm8, %v540_v31, 0  ;;  %v1085_v31 = vld [vmem:[%s2753_s2] sm:$0xff] }
 0x112   : > { %v541_v33 = vsel %vm539_vm11, %v536_v30, %v538_v32  ;;  %583 = vmatprep.mubr.bf16.mxu0 %v2289_v3  ;;  %v1086_v32 = vld [vmem:[%s2754_s3] sm:$0xff] }
 0x113   : > { %1994 = vmatprep.subr.msk.bf16.mxu0 %vm372_vm8, %v541_v33  ;;  %v1001_v35 = vpop.permute.xlu0 %1000 }
 0x114   : > { %v1002_v37 = vrot.slane %v1001_v35, 6  ;;  %552 = vmatpush1.bf16.msra.mxu0 %v546_v34 }
 0x115   : > { %v622_v38 = vpop.permute.xlu1 %621 }
 0x116   : > { %v1003_v39 = vsel %vm443_vm12, %v1002_v37, %v1001_v35 }
 0x117   : > { %v1005_v40 = vmul.bf16 %v1003_v39, %v999_v36  ;;  %v624_v41 = vpop.permute.xlu0 %623 }
 0x118   : > { %v628_v42 = vsel %vm627_vm9, %v622_v38, %v624_v41 }
 0x119   : > { %v1009_v44 = vcombine.high %v1005_v40, %v1005_v40  ;;  %v1016_v45 = vrot.slane %v1005_v40, %v2402_v13  ;;  %v626_v46 = vpop.permute.xlu1 %625  ;;  %v634_v50 = vsel %vm372_vm8, %v628_v42, 0 }
 0x11a   : > { %v629_v48 = vsel %vm627_vm9, %v624_v41, %v626_v46 }
 0x11b   : > { %1025 = vrot.lane.b32.xlu1 %v1016_v45, %s2759_s18  ;;  %v1024_v49 = vcombine.high %v1016_v45, %v1016_v45  ;;  %1997 = vmatprep.subr.msk.bf16.mxu0 %vm372_vm8, %v629_v48  ;;  %v1023_v52 = vrot.slane %v1009_v44, %v2402_v13  ;;  %v773_v53 = vpop.permute.xlu0 %772 }
 0x11d   : > { %1027 = vrot.lane.b32.xlu0 %v1024_v49, %s2759_s18  ;;  %1995 = vmatmul.mubr.msk.bf16.vlgmr.msra.gmra.mrb[0].mxu0 %vm368_vm10, %v1993_v47  ;;  %v775_v54 = vpop.permute.xlu1 %774 }
 0x11e   : > { %640 = vmatpush1.bf16.msra.mxu0 %v634_v50  ;;  %671 = vmatprep.mubr.bf16.mxu0 %v2289_v3  ;;  %v778_v59 = vsel %vm598_vm7, %v773_v53, %v775_v54 }
 0x11f   : > { %1029 = vrot.lane.b32.xlu1 %v1023_v52, %s2759_s18  ;;  %2001 = vmatprep.subr.msk.bf16.mxu0 %vm372_vm8, %v693_v51  ;;  %v777_v55 = vpop.permute.xlu0 %776  ;;  %v784_v63 = vsel %vm372_vm8, %v778_v59, 0 }
 0x120   : > { %v779_v13 = vsel %vm598_vm7, %v775_v54, %v777_v55 }
 0x121   : > { %v859_v58 = vpop.permute.xlu1 %858 }
 0x123   : > { %v861_v61 = vpop.permute.xlu0 %860 }
 0x124   : > { %v864_v2 = vsel %vm510_vm5, %v859_v58, %v861_v61 }
 0x125   : > { %v863_v60 = vpop.permute.xlu1 %862  ;;  %v870_v7 = vsel %vm372_vm8, %v864_v2, 0 }
 0x126   : > { %v865_v0 = vsel %vm510_vm5, %v861_v61, %v863_v60 }
 0x127   : > { %v939_v1 = vpop.permute.xlu0 %938 }
 0x129   : > { %1998 = vmatmul.mubr.msk.bf16.vlgmr.msra.gmra.mrb[0].mxu0 %vm368_vm10, %v1996_v56  ;;  %v941_v4 = vpop.permute.xlu1 %940 }
 0x12a   : > { %704 = vmatpush1.bf16.msra.mxu0 %v698_v57  ;;  %735 = vmatprep.mubr.bf16.mxu0 %v2289_v3  ;;  %v945_v9 = vsel %vm944_vm13, %v939_v1, %v941_v4 }
 0x12b   : > { %2004 = vmatprep.subr.msk.bf16.mxu0 %vm372_vm8, %v779_v13  ;;  %v943_v5 = vpop.permute.xlu0 %942  ;;  %v951_v11 = vsel %vm372_vm8, %v945_v9, 0 }
 0x12c   : > { %v946_v8 = vsel %vm944_vm13, %v941_v4, %v943_v5 }
 0x135   : > { %2002 = vmatmul.mubr.msk.bf16.vlgmr.msra.gmra.mrb[0].mxu0 %vm368_vm10, %v1999_v62 }
 0x136   : > { %790 = vmatpush1.bf16.msra.mxu0 %v784_v63  ;;  %821 = vmatprep.mubr.bf16.mxu0 %v2289_v3 }
 0x137   : > { %2007 = vmatprep.subr.msk.bf16.mxu0 %vm372_vm8, %v865_v0 }
 0x141   : > { %2005 = vmatmul.mubr.msk.bf16.vlgmr.msra.gmra.mrb[0].mxu0 %vm368_vm10, %v2003_v6 }
 0x142   : > { %876 = vmatpush1.bf16.msra.mxu0 %v870_v7  ;;  %907 = vmatprep.mubr.bf16.mxu0 %v2289_v3 }
 0x143   : > { %2010 = vmatprep.subr.msk.bf16.mxu0 %vm372_vm8, %v946_v8 }
 0x14d   : > { %2008 = vmatmul.mubr.msk.bf16.vlgmr.msra.gmra.mrb[0].mxu0 %vm368_vm10, %v2006_v10 }
 0x14e   : > { %957 = vmatpush1.bf16.msra.mxu0 %v951_v11  ;;  %988 = vmatprep.mubr.bf16.mxu0 %v2289_v3 }
 0x159   : > { %2011 = vmatmul.mubr.msk.bf16.vlgmr.msra.gmra.mrb[0].mxu0 %vm368_vm10, %v2009_v12 }
 0x15a   : > { %1074 = vmatprep.mubr.bf16.mxu0 %v2289_v3 }
 0x18d   : > { %v1026_v14 = vpop.permute.xlu1 %1025 }
 0x18f   : > { %v1028_v15 = vpop.permute.xlu0 %1027 }
 0x190   : > { %v1031_v16 = vsel %vm335_vm4, %v1026_v14, %v1028_v15 }
 0x191   : > { %v1030_v19 = vpop.permute.xlu1 %1029  ;;  %v1037_v21 = vsel %vm372_vm8, %v1031_v16, 0 }
 0x192   : > { %v1032_v20 = vsel %vm335_vm4, %v1028_v15, %v1030_v19 }
 0x193   : > { %2013 = vmatprep.subr.msk.bf16.mxu0 %vm372_vm8, %v1032_v20 }
 0x194   : > { %1043 = vmatpush1.bf16.msra.mxu0 %v1037_v21 }
 0x197   : > { %2014 = vmatmul.mubr.msk.bf16.vlgmr.msra.gmra.mrb[0].mxu0 %vm368_vm10, %v2012_v22 }
 0x26a   : > { %v1076_v23 = vpop.f32.mrb[0].mxu0 }
 0x26b   : > { %v1078_v24 = vpop.f32.mrb[1].mxu0  ;;  %v1097_v25 = vmul.f32 %v1076_v23, %v1076_v23 }
 0x26c   : > { %v1080_v26 = vpop.f32.mrb[2].mxu0  ;;  %v1087_v27 = vadd.f32 %v1078_v24, %v1076_v23  ;;  %v1098_v28 = vmul.f32 %v1078_v24, %v1078_v24 }
 0x26d   : > { %v1081_v29 = vpop.f32.mrb[3].mxu0 }
 0x26e   : > { %1088 = vadd.xlane.f32.xlu0 %v1087_v27  ;;  %v1099_v30 = vadd.f32 %v1098_v28, %v1097_v25 }
 0x270   : > { %1100 = vadd.xlane.f32.xlu1 %v1099_v30 }
 0x281   : > { %1137 = vperm.xlu1 %2208, %v1086_v32  }
 0x284   : > { %1130 = vperm.xlu0 %2207, %v1085_v31  }
 0x285   : > { %1176 = vrot.lane.b32.xlu1 %v2404_v17, %s2759_s18  ;;  %s2299_s18 = smov 0.0  }
 0x289   : > { %1324 = vrot.lane.b32.xlu1 %v2406_v18, %s2763_s20 }
 0x28d   : > { %1402 = vrot.lane.b32.xlu1 %v2404_v17, %s2765_s19 }
 0x291   : > { %1542 = vrot.lane.b32.xlu1 %v2406_v18, %s2294_s21 }
 0x2fb   : > { %v1089_v33 = vpop.xlane.xlu0 %1088 }
 0x2fc   : > { %v1090_v34 = vrot.slane %v1089_v33, 4 }
 0x2fd   : > { %v1101_v35 = vpop.xlane.xlu1 %1100 }
 0x2fe   : > { %v1091_v36 = vadd.f32 %v1090_v34, %v1089_v33  ;;  %v1102_v37 = vrot.slane %v1101_v35, 4 }
 0x300   : > { %v1092_v38 = vrot.slane %v1091_v36, 2  ;;  %v1103_v39 = vadd.f32 %v1102_v37, %v1101_v35 }
 0x301   : > { %v1138_v56 = vpop.permute.xlu1 %1137 }
 0x302   : > { %v1104_v40 = vrot.slane %v1103_v39, 2  ;;  %v1093_v41 = vadd.f32 %v1092_v38, %v1091_v36 }
 0x303   : > { %v1131_v53 = vpop.permute.xlu0 %1130 }
 0x304   : > { %v1094_v42 = vrot.slane %v1093_v41, 1  ;;  %v1105_v43 = vadd.f32 %v1104_v40, %v1103_v39 }
 0x305   : > { %v1177_v19 = vpop.permute.xlu1 %1176 }
 0x306   : > { %v1095_v44 = vadd.f32 %v1094_v42, %v1093_v41  ;;  %v1106_v45 = vrot.slane %v1105_v43, 1  ;;  %v1178_v20 = vrot.slane %v1177_v19, 4 }
 0x308   : > { %2144 = vpush %v1095_v44  ;;  %v1107_v46 = vadd.f32 %v1106_v45, %v1105_v43  ;;  %v1179_v21 = vsel %vm335_vm4, %v1178_v20, %v1177_v19 }
 0x30a   : > { %2146 = vpush %v1107_v46 }
 0x339   : > { %s2145_s16 = spop %2144 }
 0x33a   : > { %s1111_s17 = smul.f32 0.00048828125, %s2145_s16  ;;  %s2772_s16 = smov 111  }
 0x33b   : > { %s2147_s8 = spop %2146 }
 0x33c   : > { %s1115_s9 = smul.f32 %s1111_s17, %s1111_s17  ;;  %v1118_v47 = vstv %s1111_s17  ;;  %s269_s17 = sand.u32 1, %s2278_s25  }
 0x33d   : > { %s1114_s14 = smul.f32 0.00048828125, %s2147_s8  ;;  %v1119_v48 = vsub.f32 %v1076_v23, %v1118_v47  ;;  %v1120_v49 = vsub.f32 %v1078_v24, %v1118_v47  ;;  %v1325_v24 = vpop.permute.xlu1 %1324  ;;  %s1983_s8 = sshll.u32 %s269_s17, 4 }
 0x33e   : > { %v1326_v28 = vrot.slane %v1325_v24, 4 }
 0x33f   : > { %s1116_s15 = ssub.f32 %s1114_s14, %s1115_s9  ;;  %s2079_s14 = sshll.u32 %s2362_s28, 8 }
 0x340   : > { %v1327_v33 = vsel %vm510_vm5, %v1326_v28, %v1325_v24  ;;  %s1906_s28 = scalar_lea.sflag [#allocation5], %s269_s17 }
 0x341   : > { %s1117_s13 = smax.f32 %s2299_s18, %s1116_s15  ;;  %v1403_v30 = vpop.permute.xlu1 %1402  ;;  %s271_s15 = scalar_lea.vmem [#allocation4], %s1983_s8 }
 0x342   : > { %s1121_s20 = sadd.f32 1e-05, %s1117_s13  ;;  %v1404_v36 = vrot.slane %v1403_v30, 4  ;;  %s2771_s13 = smov 112  }
 0x344   : > { %v1122_v50 = vstv %s1121_s20  ;;  %v1405_v40 = vsel %vm598_vm7, %v1404_v36, %v1403_v30 }
 0x345   : > { %2214 = vrsqrt.f32 %v1122_v50  ;;  %v1543_v37 = vpop.permute.xlu1 %1542 }
 0x346   : > { %v1544_v41 = vrot.slane %v1543_v37, 4 }
 0x348   : > { %v1545_v45 = vsel %vm627_vm9, %v1544_v41, %v1543_v37 }
 0x34f   : > { %v2215_v51 = vpop.eup %2214 }
 0x350   : > { %2148 = vpush %v2215_v51 }
 0x381   : > { %s2149_s19 = spop %2148 }
 0x382   : > { %v1125_v52 = vstv %s2149_s19  ;;  %s2769_s19 = smov 127  }
 0x383   : > { %v1126_v54 = vmul.f32 %v1125_v52, %v1119_v48  ;;  %v1127_v55 = vmul.f32 %v1125_v52, %v1120_v49 }
 0x385   : > { %v1133_v57 = vmul.f32 %v1131_v53, %v1126_v54  ;;  %v1134_v13 = vmul.f32 %v1131_v53, %v1127_v55 }
 0x387   : > { %v1140_v58 = vadd.f32 %v1138_v56, %v1133_v57  ;;  %v1141_v59 = vadd.f32 %v1138_v56, %v1134_v13 }
 0x389   : > { %v1144_v60 = vmul.f32 0.044715, %v1140_v58  ;;  %v1145_v61 = vmul.f32 0.044715, %v1141_v59  ;;  %v1142_v9 = vmul.f32 0.5, %v1140_v58  ;;  %v1143_v11 = vmul.f32 0.5, %v1141_v59 }
 0x38b   : > { %v1146_v62 = vmul.f32 %v1144_v60, %v1140_v58  ;;  %v1147_v63 = vmul.f32 %v1145_v61, %v1141_v59  ;;  %v2017_v61 = vld [vmem:[%s2755_s4 + $0x4] sm:$0xf] }
 0x38d   : > { %v1148_v0 = vmul.f32 %v1146_v62, %v1140_v58  ;;  %v1149_v1 = vmul.f32 %v1147_v63, %v1141_v59 }
 0x38f   : > { %v1150_v2 = vadd.f32 %v1148_v0, %v1140_v58  ;;  %v1151_v4 = vadd.f32 %v1149_v1, %v1141_v59 }
 0x391   : > { %v1152_v5 = vmul.f32 0.7978846, %v1150_v2  ;;  %v1153_v6 = vmul.f32 0.7978846, %v1151_v4 }
 0x393   : > { %2216 = vtanh.f32 %v1152_v5 }
 0x394   : > { %2218 = vtanh.f32 %v1153_v6 }
 0x39d   : > { %v2217_v7 = vpop.eup %2216 }
 0x39e   : > { %v2219_v8 = vpop.eup %2218  ;;  %v1156_v10 = vadd.f32 1.0, %v2217_v7 }
 0x39f   : > { %v1157_v12 = vadd.f32 1.0, %v2219_v8 }
 0x3a0   : > { %v2562_v14 = vmul.f32 %v1156_v10, %v1142_v9 }
 0x3a1   : > { %v2564_v15 = vmul.f32 %v1157_v12, %v1143_v11 }
 0x3a3   : > { %v2568_v16 = vpack.c.bf16 %v2564_v15, %v2562_v14  ;;  %v2223_v30 = vpack.c.bf16 %v2564_v15, %v2564_v15 }
 0x3a5   : > { %1170 = vst [vmem:[#allocation3 + $0x4] sm:$0xff] %v2568_v16  ;;  %v1548_v46 = vmul.bf16 %v2568_v16, %v1545_v45 }
 0x3a7   : > { %v2047_v52 = vcombine.low %v1548_v46, %v1548_v46  ;;  %v2048_v54 = vcombine.high %v1548_v46, %v1548_v46  ;;  %v2041_v46 = vld [vmem:[%s2755_s4 + $0x10] sm:$0xf] }
 0x3ac   : > { %v1171_v22 = vld [vmem:[#allocation3] sm:$0xff]  ;;  %v1172_v23 = vld [vmem:[#allocation3 + $0x8] sm:$0xf] }
 0x3ad   : > { %v1182_v25 = vmul.bf16 %v1179_v21, %v1171_v22  ;;  %v2020_v26 = vcombine.low %v1172_v23, %v1172_v23  ;;  %v2018_v27 = vcombine.low %v1171_v22, %v1171_v22  ;;  %v1183_v29 = vmul.bf16 %v1178_v20, %v1172_v23 }
 0x3ae   : > { %v2019_v31 = vcombine.high %v1171_v22, %v1171_v22  ;;  %v1330_v34 = vmul.bf16 %v1327_v33, %v1171_v22  ;;  %v1331_v42 = vmul.bf16 %v1326_v28, %v1172_v23  ;;  %v1408_v43 = vmul.bf16 %v1405_v40, %v1171_v22 }
 0x3af   : > { %1199 = vrot.lane.b32.xlu0 %v2020_v26, %s2295_s22  ;;  %1195 = vrot.lane.b32.xlu1 %v2018_v27, %s2295_s22  ;;  %v2023_v32 = vcombine.low %v1182_v25, %v1182_v25  ;;  %v2025_v35 = vcombine.low %v1183_v29, %v1183_v29  ;;  %v2024_v38 = vcombine.high %v1182_v25, %v1182_v25  ;;  %v1184_v25 = vld [vmem:[%s2755_s4] sm:$0xf] }
 0x3b0   : > { %v2031_v39 = vcombine.high %v1330_v34, %v1330_v34  ;;  %v2030_v44 = vcombine.low %v1330_v34, %v1330_v34  ;;  %v2032_v47 = vcombine.low %v1331_v42, %v1331_v42  ;;  %v2037_v48 = vcombine.high %v1408_v43, %v1408_v43 }
 0x3b1   : > { %v1409_v50 = vmul.bf16 %v1404_v36, %v1172_v23  ;;  %v2036_v51 = vcombine.low %v1408_v43, %v1408_v43  ;;  %v2222_v22 = vpack.c.bf16 %v2562_v14, %v2562_v14 }
 0x3b3   : > { %1197 = vrot.lane.b32.xlu1 %v2019_v31, %s2295_s22  ;;  %1263 = vrot.lane.b32.xlu0 %v2023_v32, %s2297_s29  ;;  %v2038_v53 = vcombine.low %v1409_v50, %v1409_v50  ;;  %s2770_s22 = smov 113  }
 0x3b7   : > { %1620 = vrot.lane.b32.xlu1 %v2404_v17, %s2296_s23  ;;  %1267 = vrot.lane.b32.xlu0 %v2025_v35, %s2297_s29  ;;  %v2587_v17 = vld [vmem:[#allocation3 + $0xc] sm:$0xf] }
 0x3b8   : > { %v1549_v49 = vmul.bf16 %v1544_v41, %v2587_v17  ;;  %v2061_v27 = vcombine.low %v2587_v17, %v2587_v17  ;;  %v2035_v41 = vld [vmem:[%s2755_s4 + $0xc] sm:$0xf] }
 0x3bb   : > { %1265 = vrot.lane.b32.xlu1 %v2024_v38, %s2297_s29  ;;  %1344 = vrot.lane.b32.xlu0 %v2031_v39, %s2296_s23  ;;  %v2029_v38 = vld [vmem:[%s2755_s4 + $0x8] sm:$0xf] }
 0x3bf   : > { %1342 = vrot.lane.b32.xlu1 %v2030_v44, %s2296_s23  ;;  %1768 = vrot.lane.b32.xlu0 %v2406_v18, %s2297_s29  ;;  %v2049_v18 = vcombine.low %v1549_v49, %v1549_v49  ;;  %v1492_v44 = vsel %vm1207_vm14, %v2222_v22, 0 }
 0x3c3   : > { %1346 = vrot.lane.b32.xlu1 %v2032_v47, %s2296_s23  ;;  %1422 = vrot.lane.b32.xlu0 %v2037_v48, %s2294_s21  ;;  %v2046_v48 = vld [vmem:[%s2755_s4 + $0x14] sm:$0xf] }
 0x3c7   : > { %1420 = vrot.lane.b32.xlu1 %v2036_v51, %s2294_s21  ;;  %1560 = vrot.lane.b32.xlu0 %v2047_v52, %s2769_s19 }
 0x3cb   : > { %1424 = vrot.lane.b32.xlu1 %v2038_v53, %s2294_s21  ;;  %1564 = vrot.lane.b32.xlu0 %v2049_v18, %s2769_s19 }
 0x3cf   : > { %1562 = vrot.lane.b32.xlu1 %v2048_v54, %s2769_s19 }
 0x421   : > { %v1200_v55 = vpop.permute.xlu0 %1199  ;;  %v1196_v56 = vpop.permute.xlu1 %1195 }
 0x425   : > { %v1198_v57 = vpop.permute.xlu1 %1197  ;;  %v1264_v13 = vpop.permute.xlu0 %1263 }
 0x426   : > { %v1202_v58 = vsel %vm365_vm6, %v1198_v57, %v1200_v55  ;;  %v1201_v59 = vsel %vm365_vm6, %v1196_v56, %v1198_v57  ;;  %v2052_v55 = vld [vmem:[%s2755_s4 + $0x18] sm:$0xf] }
 0x427   : > { %2021 = vmatprep.subr.msk.bf16.mxu1 %vm1207_vm14, %v1202_v58  ;;  %v1209_v60 = vsel %vm1207_vm14, %v1201_v59, 0 }
 0x428   : > { %1215 = vmatpush1.bf16.msra.mxu1 %v1209_v60 }
 0x429   : > { %v1621_v62 = vpop.permute.xlu1 %1620  ;;  %v1268_v63 = vpop.permute.xlu0 %1267 }
 0x42a   : > { %v1622_v0 = vrot.slane %v1621_v62, 4 }
 0x42b   : > { %2022 = vmatmul.mubr.msk.bf16.vlgmr.msra.gmra.mrb[0].mxu1 %vm1203_vm15, %v2017_v61 }
 0x42c   : > { %v1623_v1 = vsel %vm539_vm11, %v1622_v0, %v1621_v62  ;;  %1312 = vmatprep.mubr.bf16.mxu1 %v2289_v3  ;;  %v1627_v8 = vmul.bf16 %v1622_v0, %v2587_v17 }
 0x42d   : > { %v1626_v2 = vmul.bf16 %v2568_v16, %v1623_v1  ;;  %v1266_v4 = vpop.permute.xlu1 %1265  ;;  %v1345_v5 = vpop.permute.xlu0 %1344  ;;  %v2058_v1 = vld [vmem:[%s2755_s4 + $0x1c] sm:$0xf] }
 0x42e   : > { %v1269_v6 = vsel %vm443_vm12, %v1264_v13, %v1266_v4  ;;  %v1270_v7 = vsel %vm443_vm12, %v1266_v4, %v1268_v63  ;;  %v2055_v21 = vcombine.low %v1627_v8, %v1627_v8  ;;  %v2064_v4 = vld [vmem:[%s2755_s4 + $0x20] sm:$0xf] }
 0x42f   : > { %v1275_v9 = vsel %vm1207_vm14, %v1269_v6, 0  ;;  %2026 = vmatprep.subr.msk.bf16.mxu1 %vm1207_vm14, %v1270_v7  ;;  %v2053_v10 = vcombine.low %v1626_v2, %v1626_v2  ;;  %v2054_v11 = vcombine.high %v1626_v2, %v1626_v2 }
 0x430   : > { %1281 = vmatpush1.bf16.msra.mxu1 %v1275_v9 }
 0x431   : > { %1638 = vrot.lane.b32.xlu1 %v2053_v10, %s2770_s22  ;;  %v1343_v12 = vpop.permute.xlu1 %1342  ;;  %1640 = vrot.lane.b32.xlu0 %v2054_v11, %s2770_s22  ;;  %v1769_v19 = vpop.permute.xlu0 %1768 }
 0x432   : > { %v1770_v20 = vrot.slane %v1769_v19, 4  ;;  %v1348_v23 = vsel %vm539_vm11, %v1343_v12, %v1345_v5 }
 0x433   : > { %v1354_v14 = vsel %vm1207_vm14, %v1348_v23, 0 }
 0x434   : > { %v1771_v24 = vsel %vm443_vm12, %v1770_v20, %v1769_v19  ;;  %v1775_v31 = vmul.bf16 %v1770_v20, %v2587_v17  ;;  %v1846_v19 = vld [vmem:[%s2756_s5] sm:$0xff] }
 0x435   : > { %1642 = vrot.lane.b32.xlu1 %v2055_v21, %s2770_s22  ;;  %v1347_v26 = vpop.permute.xlu1 %1346  ;;  %1708 = vrot.lane.b32.xlu0 %v2222_v22, %s2771_s13  ;;  %v1774_v29 = vmul.bf16 %v2568_v16, %v1771_v24  ;;  %v1423_v16 = vpop.permute.xlu0 %1422 }
 0x436   : > { %v1349_v28 = vsel %vm539_vm11, %v1345_v5, %v1347_v26  ;;  %v2067_v36 = vcombine.low %v1775_v31, %v1775_v31 }
 0x437   : > { %2027 = vmatmul.mubr.msk.bf16.vlgmr.msra.gmra.mrb[0].mxu1 %vm1203_vm15, %v1184_v25  ;;  %2033 = vmatprep.subr.msk.bf16.mxu1 %vm1207_vm14, %v1349_v28  ;;  %v2066_v33 = vcombine.high %v1774_v29, %v1774_v29  ;;  %v2065_v34 = vcombine.low %v1774_v29, %v1774_v29 }
 0x438   : > { %1360 = vmatpush1.bf16.msra.mxu1 %v1354_v14  ;;  %1391 = vmatprep.mubr.bf16.mxu1 %v2289_v3 }
 0x439   : > { %1710 = vrot.lane.b32.xlu1 %v2223_v30, %s2771_s13  ;;  %v1421_v32 = vpop.permute.xlu1 %1420  ;;  %1712 = vrot.lane.b32.xlu0 %v2061_v27, %s2771_s13  ;;  %v1561_v40 = vpop.permute.xlu0 %1560 }
 0x43a   : > { %v1426_v37 = vsel %vm627_vm9, %v1421_v32, %v1423_v16 }
 0x43b   : > { %v1432_v39 = vsel %vm1207_vm14, %v1426_v37, 0 }
 0x43d   : > { %v1425_v35 = vpop.permute.xlu1 %1424  ;;  %1788 = vrot.lane.b32.xlu0 %v2066_v33, %s2772_s16  ;;  %1786 = vrot.lane.b32.xlu1 %v2065_v34, %s2772_s16  ;;  %v1565_v43 = vpop.permute.xlu0 %1564 }
 0x43e   : > { %v1427_v15 = vsel %vm627_vm9, %v1423_v16, %v1425_v35 }
 0x43f   : > { %2039 = vmatprep.subr.msk.bf16.mxu1 %vm1207_vm14, %v1427_v15 }
 0x441   : > { %1790 = vrot.lane.b32.xlu1 %v2067_v36, %s2772_s16  ;;  %v1563_v42 = vpop.permute.xlu1 %1562 }
 0x442   : > { %v1567_v45 = vsel %vm598_vm7, %v1563_v42, %v1565_v43  ;;  %v1566_v17 = vsel %vm598_vm7, %v1561_v40, %v1563_v42 }
 0x443   : > { %2034 = vmatmul.mubr.msk.bf16.vlgmr.msra.gmra.mrb[0].mxu1 %vm1203_vm15, %v2029_v38  ;;  %v1572_v47 = vsel %vm1207_vm14, %v1566_v17, 0 }
 0x444   : > { %1438 = vmatpush1.bf16.msra.mxu1 %v1432_v39  ;;  %1469 = vmatprep.mubr.bf16.mxu1 %v2289_v3 }
 0x445   : > { %2044 = vmatprep.subr.msk.bf16.mxu1 %vm1207_vm14, %v2223_v30 }
 0x44f   : > { %2040 = vmatmul.mubr.msk.bf16.vlgmr.msra.gmra.mrb[0].mxu1 %vm1203_vm15, %v2035_v41 }
 0x450   : > { %1498 = vmatpush1.bf16.msra.mxu1 %v1492_v44  ;;  %1529 = vmatprep.mubr.bf16.mxu1 %v2289_v3 }
 0x451   : > { %2050 = vmatprep.subr.msk.bf16.mxu1 %vm1207_vm14, %v1567_v45 }
 0x45b   : > { %2045 = vmatmul.mubr.msk.bf16.vlgmr.msra.gmra.mrb[0].mxu1 %vm1203_vm15, %v2041_v46 }
 0x45c   : > { %1578 = vmatpush1.bf16.msra.mxu1 %v1572_v47  ;;  %1609 = vmatprep.mubr.bf16.mxu1 %v2289_v3 }
 0x467   : > { %2051 = vmatmul.mubr.msk.bf16.vlgmr.msra.gmra.mrb[0].mxu1 %vm1203_vm15, %v2046_v48 }
 0x468   : > { %1687 = vmatprep.mubr.bf16.mxu1 %v2289_v3 }
 0x4a3   : > { %v1639_v49 = vpop.permute.xlu1 %1638  ;;  %v1641_v50 = vpop.permute.xlu0 %1640 }
 0x4a4   : > { %v1644_v51 = vsel %vm510_vm5, %v1639_v49, %v1641_v50 }
 0x4a5   : > { %v1650_v54 = vsel %vm1207_vm14, %v1644_v51, 0 }
 0x4a7   : > { %v1643_v52 = vpop.permute.xlu1 %1642  ;;  %v1709_v18 = vpop.permute.xlu0 %1708 }
 0x4a8   : > { %v1645_v53 = vsel %vm510_vm5, %v1641_v50, %v1643_v52 }
 0x4a9   : > { %2056 = vmatprep.subr.msk.bf16.mxu1 %vm1207_vm14, %v1645_v53 }
 0x4aa   : > { %1656 = vmatpush1.bf16.msra.mxu1 %v1650_v54 }
 0x4ab   : > { %v1711_v56 = vpop.permute.xlu1 %1710  ;;  %v1713_v57 = vpop.permute.xlu0 %1712 }
 0x4ac   : > { %v1714_v13 = vsel %vm944_vm13, %v1709_v18, %v1711_v56  ;;  %v1715_v58 = vsel %vm944_vm13, %v1711_v56, %v1713_v57 }
 0x4ad   : > { %v1720_v59 = vsel %vm1207_vm14, %v1714_v13, 0  ;;  %2057 = vmatmul.mubr.msk.bf16.vlgmr.msra.gmra.mrb[0].mxu1 %vm1203_vm15, %v2052_v55  ;;  %2062 = vmatprep.subr.msk.bf16.mxu1 %vm1207_vm14, %v1715_v58 }
 0x4ae   : > { %1726 = vmatpush1.bf16.msra.mxu1 %v1720_v59  ;;  %1757 = vmatprep.mubr.bf16.mxu1 %v2289_v3 }
 0x4af   : > { %v1787_v60 = vpop.permute.xlu1 %1786  ;;  %v1789_v61 = vpop.permute.xlu0 %1788 }
 0x4b0   : > { %v1792_v0 = vsel %vm335_vm4, %v1787_v60, %v1789_v61 }
 0x4b1   : > { %v1798_v2 = vsel %vm1207_vm14, %v1792_v0, 0 }
 0x4b3   : > { %v1791_v62 = vpop.permute.xlu1 %1790 }
 0x4b4   : > { %v1793_v63 = vsel %vm335_vm4, %v1789_v61, %v1791_v62 }
 0x4b5   : > { %2068 = vmatprep.subr.msk.bf16.mxu1 %vm1207_vm14, %v1793_v63 }
 0x4b9   : > { %2063 = vmatmul.mubr.msk.bf16.vlgmr.msra.gmra.mrb[0].mxu1 %vm1203_vm15, %v2058_v1 }
 0x4ba   : > { %1804 = vmatpush1.bf16.msra.mxu1 %v1798_v2  ;;  %1835 = vmatprep.mubr.bf16.mxu1 %v2289_v3  ;;  %v1847_v3 = vld [vmem:[%s2757_s6] sm:$0xff] }
 0x4c5   : > { %2069 = vmatmul.mubr.msk.bf16.vlgmr.msra.gmra.mrb[0].mxu1 %vm1203_vm15, %v2064_v4 }
 0x598   : > { %v1837_v5 = vpop.f32.mrb[0].mxu1 }
 0x599   : > { %v1839_v6 = vpop.f32.mrb[1].mxu1  ;;  %v1858_v7 = vmul.f32 %v1837_v5, %v1837_v5 }
 0x59a   : > { %v1841_v8 = vpop.f32.mrb[2].mxu1  ;;  %v1848_v9 = vadd.f32 %v1839_v6, %v1837_v5  ;;  %v1859_v10 = vmul.f32 %v1839_v6, %v1839_v6 }
 0x59b   : > { %v1842_v11 = vpop.f32.mrb[3].mxu1 }
 0x59c   : > { %1849 = vadd.xlane.f32.xlu0 %v1848_v9  ;;  %v1860_v12 = vadd.f32 %v1859_v10, %v1858_v7 }
 0x59e   : > { %1861 = vadd.xlane.f32.xlu1 %v1860_v12 }
 0x5af   : > { %1898 = vperm.xlu1 %2208, %v1847_v3  }
 0x5b2   : > { %1891 = vperm.xlu0 %2207, %v1846_v19  }
 0x629   : > { %v1850_v20 = vpop.xlane.xlu0 %1849 }
 0x62a   : > { %v1851_v21 = vrot.slane %v1850_v20, 4 }
 0x62b   : > { %v1862_v22 = vpop.xlane.xlu1 %1861 }
 0x62c   : > { %v1852_v23 = vadd.f32 %v1851_v21, %v1850_v20  ;;  %v1863_v24 = vrot.slane %v1862_v22, 4 }
 0x62e   : > { %v1853_v25 = vrot.slane %v1852_v23, 2  ;;  %v1864_v26 = vadd.f32 %v1863_v24, %v1862_v22 }
 0x62f   : > { %v1899_v42 = vpop.permute.xlu1 %1898 }
 0x630   : > { %v1865_v27 = vrot.slane %v1864_v26, 2  ;;  %v1854_v28 = vadd.f32 %v1853_v25, %v1852_v23 }
 0x631   : > { %v1892_v39 = vpop.permute.xlu0 %1891 }
 0x632   : > { %v1855_v14 = vrot.slane %v1854_v28, 1  ;;  %v1866_v29 = vadd.f32 %v1865_v27, %v1864_v26 }
 0x634   : > { %v1856_v30 = vadd.f32 %v1855_v14, %v1854_v28  ;;  %v1867_v31 = vrot.slane %v1866_v29, 1 }
 0x636   : > { %2150 = vpush %v1856_v30  ;;  %v1868_v32 = vadd.f32 %v1867_v31, %v1866_v29 }
 0x638   : > { %2152 = vpush %v1868_v32 }
 0x667   : > { %s2151_s19 = spop %2150 }
 0x668   : > { %s1872_s20 = smul.f32 0.00048828125, %s2151_s19  ;;  %s1920_s19 = sshll.u32 %s271_s15, 4  ;;  %s2711_s19 = int_to_ptr.vmem [resolvable:$true] %s1920_s19 }
 0x669   : > { %s2153_s21 = spop %2152 }
 0x66a   : > { %s1876_s22 = smul.f32 %s1872_s20, %s1872_s20  ;;  %v1879_v33 = vstv %s1872_s20 }
 0x66b   : > { %s1875_s23 = smul.f32 0.00048828125, %s2153_s21  ;;  %v1880_v34 = vsub.f32 %v1837_v5, %v1879_v33  ;;  %v1881_v16 = vsub.f32 %v1839_v6, %v1879_v33  ;;  %s2709_s21 = scalar_lea.hbm %s2758_s7, %s2079_s14 }
 0x66d   : > { %s1877_s29 = ssub.f32 %s1875_s23, %s1876_s22  ;;  %s2224_s22 = scalar_lea.vmem %s2711_s19, 256 }
 0x66e   : > { %p2225_p11 = scmp.ne.s32.totalorder %s2711_s19, %s2224_s22  ;;  %s2300_s23 = smov [#allocation4]  }
 0x66f   : > { %s1878_s13 = smax.f32 %s2299_s18, %s1877_s29  ;;  %s2228_s29 = sshll.u32 %s2300_s23, 4  ;;  %s2229_s29 = int_to_ptr.vmem [resolvable:$false] %s2228_s29 }
 0x670   : > { %s1882_s16 = sadd.f32 1e-05, %s1878_s13  ;;  %p2226_p12 = pnand %p2225_p11, %p2379_p5 }
 0x671   : > { %s2230_s13 = scalar_lea.vmem %s2229_s29, 512  ;;  %p2231_p0 = scmp.lt.s32.totalorder %s2711_s19, %s2229_s29 }
 0x672   : > { %v1883_v35 = vstv %s1882_s16  ;;  %p2227_p13 = pneg %p2226_p12  ;;  %p2232_p1 = scmp.lt.s32.totalorder %s2230_s13, %s2224_s22 }
 0x673   : > { %2220 = vrsqrt.f32 %v1883_v35 }
 0x674   : > { %p2233_p2 = por %p2232_p1, %p2231_p0 }
 0x676   : > { %p2234_p3 = pnand %p2233_p2, %p2227_p13 }
 0x67d   : > { %v2221_v36 = vpop.eup %2220 }
 0x67e   : > { %2154 = vpush %v2221_v36 }
 0x6af   : > { %s2155_s9 = spop %2154 }
 0x6b0   : > { %v1886_v15 = vstv %s2155_s9 }
 0x6b1   : > { %v1887_v37 = vmul.f32 %v1886_v15, %v1880_v34  ;;  %v1888_v38 = vmul.f32 %v1886_v15, %v1881_v16 }
 0x6b3   : > { %v1894_v40 = vmul.f32 %v1892_v39, %v1887_v37  ;;  %v1895_v41 = vmul.f32 %v1892_v39, %v1888_v38 }
 0x6b5   : > { %v1901_v43 = vadd.f32 %v1899_v42, %v1894_v40  ;;  %v1902_v44 = vadd.f32 %v1899_v42, %v1895_v41 }
 0x6b7   : > { %1903 = vst [vmem:[%s271_s15] sm:$0xff] %v1901_v43  ;;  %1904 = vst [vmem:[%s271_s15 + $0x8] sm:$0xff] %v1902_v44 }
 0x6b8   : > { %2237 = shalt.err (!%p2234_p3)
}
 0x6b9   : > { %s2238_s16 = scalar_lea.hbm %s2709_s21, 256  ;;  %s2242_s9 = scalar_lea.hbm %s2758_s7, 512 }
 0x6ba   : > { %p2239_p4 = scmp.ne.s32.totalorder %s2709_s21, %s2238_s16  ;;  %p2243_p9 = scmp.lt.u32.totalorder %s2709_s21, %s2758_s7 }
 0x6bb   : > { %p2244_p10 = scmp.lt.u32.totalorder %s2242_s9, %s2238_s16  ;;  %p2246_p12 = scmp.lt.u32.totalorder %s2238_s16, %s2709_s21 }
 0x6bc   : > { %p2240_p7 = pnand %p2239_p4, %p2379_p5 }
 0x6bd   : > { %p2245_p11 = por %p2244_p10, %p2243_p9 }
 0x6be   : > { %p2241_p8 = pneg %p2240_p7 }
 0x6bf   : > { %p2247_p13 = por %p2246_p12, %p2245_p11 }
 0x6c1   : > { %p2248_p0 = pnand %p2247_p13, %p2241_p8 }
 0x6c3   : > { %2251 = shalt.err (!%p2248_p0)
}
 0x6c4   : > { %2156 = dma.vmem_to_hbm [thread:$0]  (%p2379_p5), %s2711_s19, 256, %s2709_s21, %s1906_s28  }
 0x6c5 PF: > { %p2162_p1 = scmp.ge.s32.totalorder %s2286_s27, 2  ;;  %s1932_s18 = sand.u32 1, %s2274_s24  }
 0x6c6   : > { %s1933_s20 = scalar_lea.sflag [#allocation5], %s1932_s18 }
 0x6c7   : > { %p2159_p2 = pnand %p2162_p1, %p2383_p6 }
 0x6c9   : > { %2269 = dma.done.wait (!%p2159_p2), %s1933_s20, 256  }
 0x6ca   : > { %2271 = vsyncadd (!%p2159_p2), %s1933_s20, 4294967040  ;;  %p17_p3 = scmp.ge.s32.totalorder %s2366_s30, 4   ;;  %s2773_s24 = smov %s2278_s25 }
 0x6cb   : > { %s2774_s25 = smov %s2282_s26  ;;  %s2775_s26 = smov %s2377_s10 }
 0x6cc   : > { %s2776_s27 = smov %s2366_s30  ;;  %19 = sbr.rel (!%p17_p3) target bundleno = 3 (0x3), region = 99 }
 0x6d3   :  { %1938 = vsyncpa [#allocation5], 1 }
 0x6d4   :  { %1940 = vsyncpa [#allocation5 + $0x1], 1 }

</bundles_post_ra>
